<compile_context>
chip_gen: v7x
topology: tpu7x:2x2x1
jax: 0.10.0
libtpu: 0.0.40
codegen_flags: <defaults>
</compile_context>

<pallas_src>
import functools

import jax
import jax.numpy as jnp
from jax import lax
from jax.experimental import pallas as pl
from jax.experimental.pallas import tpu as pltpu


# ------------------------------ fused kernel -------------------------------

def _encode_kernel(spec_ref, wp_ref, bp_ref, wb_ref, bb_ref, wh_ref, bh_ref,
                   vec_ref, sched_ref, x_sc, *, dilations, neg_slope, ctx):
    H, T = x_sc.shape

    # --- 1x1 input projection (bf16 MXU, f32 accumulate) -------------------
    x_sc[...] = (jnp.dot(wp_ref[...], spec_ref[0],
                         preferred_element_type=jnp.float32) + bp_ref[...])

    # column index, hoisted once per grid step (reused by every block + sparsify)
    col = lax.broadcasted_iota(jnp.int32, (H, T), 1)

    # --- anti-causal dilated conv stack -------------------------------------
    # y[t] = W0 @ x[t] + W1 @ x[t + d] + b  (right/future zero padding),
    # computed as one stacked (2H,H)@(H,T) matmul, then shifting the W1 half.
    for i, d in enumerate(dilations):
        x = x_sc[...]                                              # (H, T) f32
        p = jnp.dot(wb_ref[i], x.astype(jnp.bfloat16),
                    preferred_element_type=jnp.float32)            # (2H, T)
        if d < T:
            # shift-left by d, zero-fill the future tail
            p1 = jnp.concatenate(
                [p[H:, d:], jnp.zeros((H, d), jnp.float32)], axis=1)
        else:
            p1 = jnp.zeros((H, T), jnp.float32)
        y = p[:H] + p1 + bb_ref[i]
        y = jnp.where(y > 0, y, neg_slope * y)                     # leaky_relu(0.2)
        x_sc[...] = y + x                                          # residual

    # --- fused event-vector / event-switch heads ----------------------------
    heads = (jnp.dot(wh_ref[...], x_sc[...].astype(jnp.bfloat16),
                     preferred_element_type=jnp.float32) + bh_ref[...])
    ev = heads[:ctx]                                               # (CTX, T)
    sw = heads[ctx:ctx + 1]                                        # (1, T)

    # --- relu + half-frame mask + top-1 sparsify + scheduling ---------------
    col1 = col[:1]                                                 # (1, T)
    attn = jnp.maximum(sw, 0.0)
    attn = jnp.where(col1 < (T // 2), attn, 0.0)                   # zero second half
    max_val = jnp.max(attn, axis=-1, keepdims=True)                # (1, 1)
    # smallest index attaining the max (matches torch.topk(k=1) tie behavior)
    idx = jnp.min(jnp.where(attn == max_val, col1, T),
                  axis=-1, keepdims=True)                          # (1, 1)
    onehot = (col1 == idx).astype(jnp.float32)                     # (1, T)
    sched_ref[0] = onehot * max_val
    # gather the event vector at the selected frame: (1,T) x (CTX,T) over T
    vec_ref[0] = lax.dot_general(onehot, ev, (((1,), (1,)), ((), ())),
                                 preferred_element_type=jnp.float32)


# ------------------------------- model glue --------------------------------

def init_params(key, in_channels, hidden, ctx, dilations, std=0.02):
    """Deterministic params, std=0.02 normal (matching make_initializer(0.02))."""
    n_blocks = len(dilations)
    head_rows = ((ctx + 1 + 7) // 8) * 8            # pad head rows to sublane multiple
    k0, k1, k2 = jax.random.split(key, 3)

    w_proj = (std * jax.random.normal(k0, (hidden, in_channels), jnp.float32)
              ).astype(jnp.bfloat16)
    b_proj = jnp.zeros((hidden, 1), jnp.float32)

    # per-block kernel-2 conv weights, stacked as [W0; W1] -> (2H, H)
    w_blk = (std * jax.random.normal(k1, (n_blocks, 2 * hidden, hidden), jnp.float32)
             ).astype(jnp.bfloat16)
    b_blk = jnp.zeros((n_blocks, hidden, 1), jnp.float32)

    # heads: rows [0:ctx] = to_event_vectors, row ctx = to_event_switch, rest zero pad
    w_head_core = std * jax.random.normal(k2, (ctx + 1, hidden), jnp.float32)
    w_head = jnp.zeros((head_rows, hidden), jnp.float32)
    w_head = w_head.at[: ctx + 1].set(w_head_core).astype(jnp.bfloat16)
    b_head = jnp.zeros((head_rows, 1), jnp.float32)

    return {
        "w_proj": w_proj, "b_proj": b_proj,
        "w_blk": w_blk, "b_blk": b_blk,
        "w_head": w_head, "b_head": b_head,
        "dilations": tuple(int(d) for d in dilations),
        "ctx": int(ctx),
    }


def model_encode(spec, params):
    """Equivalent of Model.encode(transformed) with n_events = 1.

    spec: (B, in_channels, n_frames) float32 — already-transformed spectrogram.
    returns: vecs (B, 1, context_dim), scheduling (B, 1, n_frames)
    """
    B, Cin, T = spec.shape
    H = params["w_proj"].shape[0]
    n_blocks = params["w_blk"].shape[0]
    head_rows = params["w_head"].shape[0]
    ctx = params["ctx"]

    kern = functools.partial(_encode_kernel,
                             dilations=params["dilations"],
                             neg_slope=0.2, ctx=ctx)

    vecs, scheduling = pl.pallas_call(
        kern,
        out_shape=(jax.ShapeDtypeStruct((B, 1, ctx), jnp.float32),
                   jax.ShapeDtypeStruct((B, 1, T), jnp.float32)),
        grid=(B,),
        in_specs=[
            pl.BlockSpec((1, Cin, T), lambda i: (i, 0, 0)),            # spectrogram
            pl.BlockSpec((H, Cin), lambda i: (0, 0)),                  # resident weights
            pl.BlockSpec((H, 1), lambda i: (0, 0)),
            pl.BlockSpec((n_blocks, 2 * H, H), lambda i: (0, 0, 0)),
            pl.BlockSpec((n_blocks, H, 1), lambda i: (0, 0, 0)),
            pl.BlockSpec((head_rows, H), lambda i: (0, 0)),
            pl.BlockSpec((head_rows, 1), lambda i: (0, 0)),
        ],
        out_specs=(pl.BlockSpec((1, 1, ctx), lambda i: (i, 0, 0)),
                   pl.BlockSpec((1, 1, T), lambda i: (i, 0, 0))),
        scratch_shapes=[pltpu.VMEM((H, T), jnp.float32)],              # resident activation
        compiler_params=pltpu.CompilerParams(
            dimension_semantics=("parallel",),
            vmem_limit_bytes=32 * 1024 * 1024),
    )(spec.astype(jnp.bfloat16),
      params["w_proj"], params["b_proj"],
      params["w_blk"], params["b_blk"],
      params["w_head"], params["b_head"])
    return vecs, scheduling


if __name__ == "__main__":
    # Small shapes consistent with the module (scaled down from
    # in_channels=1024, hidden=256, context=32, n_frames=512).
    B, C_IN, HID, CTX, T = 2, 64, 32, 16, 128
    DILATIONS = (1, 2, 4, 8, 16, 32, 64, 1)

    key = jax.random.PRNGKey(0)
    pkey, xkey = jax.random.split(key)
    params = init_params(pkey, C_IN, HID, CTX, DILATIONS)

    # input stands in for transform(audio): (B, in_channels, n_frames)
    spec = jax.random.normal(xkey, (B, C_IN, T), dtype=jnp.float32)

    vecs, scheduling = model_encode(spec, params)
    jax.block_until_ready((vecs, scheduling))

    assert vecs.shape == (B, 1, CTX)
    assert scheduling.shape == (B, 1, T)
    print("KERNEL_OK")
</pallas_src>

<mosaic_0001>
module attributes {stable_mosaic.version = 11 : i64} {
  func.func @_encode_kernel(%arg0: i32, %arg1: memref<1x64x128xbf16, #tpu.memory_space<vmem>>, %arg2: memref<32x64xbf16, #tpu.memory_space<vmem>>, %arg3: memref<32x1xf32, #tpu.memory_space<vmem>>, %arg4: memref<8x64x32xbf16, #tpu.memory_space<vmem>>, %arg5: memref<8x32x1xf32, #tpu.memory_space<vmem>>, %arg6: memref<24x32xbf16, #tpu.memory_space<vmem>>, %arg7: memref<24x1xf32, #tpu.memory_space<vmem>>, %arg8: memref<1x1x16xf32, #tpu.memory_space<vmem>>, %arg9: memref<1x1x128xf32, #tpu.memory_space<vmem>>, %arg10: memref<32x128xf32, #tpu.memory_space<vmem>>) attributes {dimension_semantics = [#tpu.dimension_semantics<parallel>], iteration_bounds = array<i64: 2>, scalar_prefetch = 0 : i64, scratch_operands = 1 : i64, tpu.core_type = #tpu.core_type<tc>, window_params = [{transform_indices = @transform_0, window_bounds = array<i64: 1, 64, 128>}, {pipeline_mode = #tpu.pipeline_mode<synchronous>, transform_indices = @transform_1, window_bounds = array<i64: 32, 64>}, {pipeline_mode = #tpu.pipeline_mode<synchronous>, transform_indices = @transform_2, window_bounds = array<i64: 32, 1>}, {pipeline_mode = #tpu.pipeline_mode<synchronous>, transform_indices = @transform_3, window_bounds = array<i64: 8, 64, 32>}, {pipeline_mode = #tpu.pipeline_mode<synchronous>, transform_indices = @transform_4, window_bounds = array<i64: 8, 32, 1>}, {pipeline_mode = #tpu.pipeline_mode<synchronous>, transform_indices = @transform_5, window_bounds = array<i64: 24, 32>}, {pipeline_mode = #tpu.pipeline_mode<synchronous>, transform_indices = @transform_6, window_bounds = array<i64: 24, 1>}, {transform_indices = @transform_7, window_bounds = array<i64: 1, 1, 16>}, {transform_indices = @transform_8, window_bounds = array<i64: 1, 1, 128>}]} {
    %c0 = arith.constant 0 : index
    %c0_0 = arith.constant 0 : index
    %0 = vector.load %arg2[%c0, %c0_0] : memref<32x64xbf16, #tpu.memory_space<vmem>>, vector<32x64xbf16>
    %c0_1 = arith.constant 0 : index
    %c0_2 = arith.constant 0 : index
    %c0_3 = arith.constant 0 : index
    %1 = vector.load %arg1[%c0_1, %c0_2, %c0_3] : memref<1x64x128xbf16, #tpu.memory_space<vmem>>, vector<1x64x128xbf16>
    %2 = vector.shape_cast %1 : vector<1x64x128xbf16> to vector<64x128xbf16>
    %cst = arith.constant dense<0.000000e+00> : vector<32x128xf32>
    %3 = tpu.matmul %0, %2, %cst {dimension_numbers = #tpu.dot_dimension_numbers<[1], [0], [0], [1], [0, 0, 1, 1], [], []>} : vector<32x64xbf16>, vector<64x128xbf16>, vector<32x128xf32> -> vector<32x128xf32>
    %c0_4 = arith.constant 0 : index
    %c0_5 = arith.constant 0 : index
    %4 = vector.load %arg3[%c0_4, %c0_5] : memref<32x1xf32, #tpu.memory_space<vmem>>, vector<32x1xf32>
    %5 = vector.broadcast %4 : vector<32x1xf32> to vector<32x128xf32>
    %6 = arith.addf %3, %5 : vector<32x128xf32>
    %c0_6 = arith.constant 0 : index
    %c0_7 = arith.constant 0 : index
    %7 = vector.load %arg10[%c0_6, %c0_7] : memref<32x128xf32, #tpu.memory_space<vmem>>, vector<32x128xf32>
    tpu.vector_store %arg10[%c0_6, %c0_7], %6 {strides = array<i32>} : memref<32x128xf32, #tpu.memory_space<vmem>>, vector<32x128xf32>,
    %8 = tpu.iota {dimensions = array<i32: 1>} : vector<32x128xi32>
    %c0_8 = arith.constant 0 : index
    %c0_9 = arith.constant 0 : index
    %9 = vector.load %arg10[%c0_8, %c0_9] : memref<32x128xf32, #tpu.memory_space<vmem>>, vector<32x128xf32>
    %c0_10 = arith.constant 0 : index
    %c0_11 = arith.constant 0 : index
    %c0_12 = arith.constant 0 : index
    %10 = vector.load %arg4[%c0_10, %c0_11, %c0_12] : memref<8x64x32xbf16, #tpu.memory_space<vmem>>, vector<1x64x32xbf16>
    %11 = vector.shape_cast %10 : vector<1x64x32xbf16> to vector<64x32xbf16>
    %12 = arith.truncf %9 : vector<32x128xf32> to vector<32x128xbf16>
    %cst_13 = arith.constant dense<0.000000e+00> : vector<64x128xf32>
    %13 = tpu.matmul %11, %12, %cst_13 {dimension_numbers = #tpu.dot_dimension_numbers<[1], [0], [0], [1], [0, 0, 1, 1], [], []>} : vector<64x32xbf16>, vector<32x128xbf16>, vector<64x128xf32> -> vector<64x128xf32>
    %14 = vector.extract_strided_slice %13 {offsets = [32, 1], sizes = [32, 127], strides = [1, 1]} : vector<64x128xf32> to vector<32x127xf32>
    %cst_14 = arith.constant 0.000000e+00 : f32
    %15 = vector.broadcast %cst_14 : f32 to vector<32x1xf32>
    %16 = tpu.concatenate %14, %15 in 1 : vector<32x127xf32>, vector<32x1xf32> -> vector<32x128xf32>
    %17 = vector.extract_strided_slice %13 {offsets = [0, 0], sizes = [32, 128], strides = [1, 1]} : vector<64x128xf32> to vector<32x128xf32>
    %18 = arith.addf %17, %16 : vector<32x128xf32>
    %c0_15 = arith.constant 0 : index
    %c0_16 = arith.constant 0 : index
    %c0_17 = arith.constant 0 : index
    %19 = vector.load %arg5[%c0_15, %c0_16, %c0_17] : memref<8x32x1xf32, #tpu.memory_space<vmem>>, vector<1x32x1xf32>
    %20 = vector.shape_cast %19 : vector<1x32x1xf32> to vector<32x1xf32>
    %21 = vector.broadcast %20 : vector<32x1xf32> to vector<32x128xf32>
    %22 = arith.addf %18, %21 : vector<32x128xf32>
    %cst_18 = arith.constant 0.000000e+00 : f32
    %23 = vector.broadcast %cst_18 : f32 to vector<32x128xf32>
    %24 = arith.cmpf ogt, %22, %23 : vector<32x128xf32>
    %cst_19 = arith.constant 2.000000e-01 : f32
    %25 = vector.broadcast %cst_19 : f32 to vector<32x128xf32>
    %26 = arith.mulf %25, %22 : vector<32x128xf32>
    %27 = arith.select %24, %22, %26 : vector<32x128xi1>, vector<32x128xf32>
    %28 = arith.addf %27, %9 : vector<32x128xf32>
    %c0_20 = arith.constant 0 : index
    %c0_21 = arith.constant 0 : index
    %29 = vector.load %arg10[%c0_20, %c0_21] : memref<32x128xf32, #tpu.memory_space<vmem>>, vector<32x128xf32>
    tpu.vector_store %arg10[%c0_20, %c0_21], %28 {strides = array<i32>} : memref<32x128xf32, #tpu.memory_space<vmem>>, vector<32x128xf32>,
    %c0_22 = arith.constant 0 : index
    %c0_23 = arith.constant 0 : index
    %30 = vector.load %arg10[%c0_22, %c0_23] : memref<32x128xf32, #tpu.memory_space<vmem>>, vector<32x128xf32>
    %c1 = arith.constant 1 : index
    %c0_24 = arith.constant 0 : index
    %c0_25 = arith.constant 0 : index
    %31 = vector.load %arg4[%c1, %c0_24, %c0_25] : memref<8x64x32xbf16, #tpu.memory_space<vmem>>, vector<1x64x32xbf16>
    %32 = vector.shape_cast %31 : vector<1x64x32xbf16> to vector<64x32xbf16>
    %33 = arith.truncf %30 : vector<32x128xf32> to vector<32x128xbf16>
    %cst_26 = arith.constant dense<0.000000e+00> : vector<64x128xf32>
    %34 = tpu.matmul %32, %33, %cst_26 {dimension_numbers = #tpu.dot_dimension_numbers<[1], [0], [0], [1], [0, 0, 1, 1], [], []>} : vector<64x32xbf16>, vector<32x128xbf16>, vector<64x128xf32> -> vector<64x128xf32>
    %35 = vector.extract_strided_slice %34 {offsets = [32, 2], sizes = [32, 126], strides = [1, 1]} : vector<64x128xf32> to vector<32x126xf32>
    %cst_27 = arith.constant 0.000000e+00 : f32
    %36 = vector.broadcast %cst_27 : f32 to vector<32x2xf32>
    %37 = tpu.concatenate %35, %36 in 1 : vector<32x126xf32>, vector<32x2xf32> -> vector<32x128xf32>
    %38 = vector.extract_strided_slice %34 {offsets = [0, 0], sizes = [32, 128], strides = [1, 1]} : vector<64x128xf32> to vector<32x128xf32>
    %39 = arith.addf %38, %37 : vector<32x128xf32>
    %c1_28 = arith.constant 1 : index
    %c0_29 = arith.constant 0 : index
    %c0_30 = arith.constant 0 : index
    %40 = vector.load %arg5[%c1_28, %c0_29, %c0_30] : memref<8x32x1xf32, #tpu.memory_space<vmem>>, vector<1x32x1xf32>
    %41 = vector.shape_cast %40 : vector<1x32x1xf32> to vector<32x1xf32>
    %42 = vector.broadcast %41 : vector<32x1xf32> to vector<32x128xf32>
    %43 = arith.addf %39, %42 : vector<32x128xf32>
    %cst_31 = arith.constant 0.000000e+00 : f32
    %44 = vector.broadcast %cst_31 : f32 to vector<32x128xf32>
    %45 = arith.cmpf ogt, %43, %44 : vector<32x128xf32>
    %cst_32 = arith.constant 2.000000e-01 : f32
    %46 = vector.broadcast %cst_32 : f32 to vector<32x128xf32>
    %47 = arith.mulf %46, %43 : vector<32x128xf32>
    %48 = arith.select %45, %43, %47 : vector<32x128xi1>, vector<32x128xf32>
    %49 = arith.addf %48, %30 : vector<32x128xf32>
    %c0_33 = arith.constant 0 : index
    %c0_34 = arith.constant 0 : index
    %50 = vector.load %arg10[%c0_33, %c0_34] : memref<32x128xf32, #tpu.memory_space<vmem>>, vector<32x128xf32>
    tpu.vector_store %arg10[%c0_33, %c0_34], %49 {strides = array<i32>} : memref<32x128xf32, #tpu.memory_space<vmem>>, vector<32x128xf32>,
    %c0_35 = arith.constant 0 : index
    %c0_36 = arith.constant 0 : index
    %51 = vector.load %arg10[%c0_35, %c0_36] : memref<32x128xf32, #tpu.memory_space<vmem>>, vector<32x128xf32>
    %c2 = arith.constant 2 : index
    %c0_37 = arith.constant 0 : index
    %c0_38 = arith.constant 0 : index
    %52 = vector.load %arg4[%c2, %c0_37, %c0_38] : memref<8x64x32xbf16, #tpu.memory_space<vmem>>, vector<1x64x32xbf16>
    %53 = vector.shape_cast %52 : vector<1x64x32xbf16> to vector<64x32xbf16>
    %54 = arith.truncf %51 : vector<32x128xf32> to vector<32x128xbf16>
    %cst_39 = arith.constant dense<0.000000e+00> : vector<64x128xf32>
    %55 = tpu.matmul %53, %54, %cst_39 {dimension_numbers = #tpu.dot_dimension_numbers<[1], [0], [0], [1], [0, 0, 1, 1], [], []>} : vector<64x32xbf16>, vector<32x128xbf16>, vector<64x128xf32> -> vector<64x128xf32>
    %56 = vector.extract_strided_slice %55 {offsets = [32, 4], sizes = [32, 124], strides = [1, 1]} : vector<64x128xf32> to vector<32x124xf32>
    %cst_40 = arith.constant 0.000000e+00 : f32
    %57 = vector.broadcast %cst_40 : f32 to vector<32x4xf32>
    %58 = tpu.concatenate %56, %57 in 1 : vector<32x124xf32>, vector<32x4xf32> -> vector<32x128xf32>
    %59 = vector.extract_strided_slice %55 {offsets = [0, 0], sizes = [32, 128], strides = [1, 1]} : vector<64x128xf32> to vector<32x128xf32>
    %60 = arith.addf %59, %58 : vector<32x128xf32>
    %c2_41 = arith.constant 2 : index
    %c0_42 = arith.constant 0 : index
    %c0_43 = arith.constant 0 : index
    %61 = vector.load %arg5[%c2_41, %c0_42, %c0_43] : memref<8x32x1xf32, #tpu.memory_space<vmem>>, vector<1x32x1xf32>
    %62 = vector.shape_cast %61 : vector<1x32x1xf32> to vector<32x1xf32>
    %63 = vector.broadcast %62 : vector<32x1xf32> to vector<32x128xf32>
    %64 = arith.addf %60, %63 : vector<32x128xf32>
    %cst_44 = arith.constant 0.000000e+00 : f32
    %65 = vector.broadcast %cst_44 : f32 to vector<32x128xf32>
    %66 = arith.cmpf ogt, %64, %65 : vector<32x128xf32>
    %cst_45 = arith.constant 2.000000e-01 : f32
    %67 = vector.broadcast %cst_45 : f32 to vector<32x128xf32>
    %68 = arith.mulf %67, %64 : vector<32x128xf32>
    %69 = arith.select %66, %64, %68 : vector<32x128xi1>, vector<32x128xf32>
    %70 = arith.addf %69, %51 : vector<32x128xf32>
    %c0_46 = arith.constant 0 : index
    %c0_47 = arith.constant 0 : index
    %71 = vector.load %arg10[%c0_46, %c0_47] : memref<32x128xf32, #tpu.memory_space<vmem>>, vector<32x128xf32>
    tpu.vector_store %arg10[%c0_46, %c0_47], %70 {strides = array<i32>} : memref<32x128xf32, #tpu.memory_space<vmem>>, vector<32x128xf32>,
    %c0_48 = arith.constant 0 : index
    %c0_49 = arith.constant 0 : index
    %72 = vector.load %arg10[%c0_48, %c0_49] : memref<32x128xf32, #tpu.memory_space<vmem>>, vector<32x128xf32>
    %c3 = arith.constant 3 : index
    %c0_50 = arith.constant 0 : index
    %c0_51 = arith.constant 0 : index
    %73 = vector.load %arg4[%c3, %c0_50, %c0_51] : memref<8x64x32xbf16, #tpu.memory_space<vmem>>, vector<1x64x32xbf16>
    %74 = vector.shape_cast %73 : vector<1x64x32xbf16> to vector<64x32xbf16>
    %75 = arith.truncf %72 : vector<32x128xf32> to vector<32x128xbf16>
    %cst_52 = arith.constant dense<0.000000e+00> : vector<64x128xf32>
    %76 = tpu.matmul %74, %75, %cst_52 {dimension_numbers = #tpu.dot_dimension_numbers<[1], [0], [0], [1], [0, 0, 1, 1], [], []>} : vector<64x32xbf16>, vector<32x128xbf16>, vector<64x128xf32> -> vector<64x128xf32>
    %77 = vector.extract_strided_slice %76 {offsets = [32, 8], sizes = [32, 120], strides = [1, 1]} : vector<64x128xf32> to vector<32x120xf32>
    %cst_53 = arith.constant 0.000000e+00 : f32
    %78 = vector.broadcast %cst_53 : f32 to vector<32x8xf32>
    %79 = tpu.concatenate %77, %78 in 1 : vector<32x120xf32>, vector<32x8xf32> -> vector<32x128xf32>
    %80 = vector.extract_strided_slice %76 {offsets = [0, 0], sizes = [32, 128], strides = [1, 1]} : vector<64x128xf32> to vector<32x128xf32>
    %81 = arith.addf %80, %79 : vector<32x128xf32>
    %c3_54 = arith.constant 3 : index
    %c0_55 = arith.constant 0 : index
    %c0_56 = arith.constant 0 : index
    %82 = vector.load %arg5[%c3_54, %c0_55, %c0_56] : memref<8x32x1xf32, #tpu.memory_space<vmem>>, vector<1x32x1xf32>
    %83 = vector.shape_cast %82 : vector<1x32x1xf32> to vector<32x1xf32>
    %84 = vector.broadcast %83 : vector<32x1xf32> to vector<32x128xf32>
    %85 = arith.addf %81, %84 : vector<32x128xf32>
    %cst_57 = arith.constant 0.000000e+00 : f32
    %86 = vector.broadcast %cst_57 : f32 to vector<32x128xf32>
    %87 = arith.cmpf ogt, %85, %86 : vector<32x128xf32>
    %cst_58 = arith.constant 2.000000e-01 : f32
    %88 = vector.broadcast %cst_58 : f32 to vector<32x128xf32>
    %89 = arith.mulf %88, %85 : vector<32x128xf32>
    %90 = arith.select %87, %85, %89 : vector<32x128xi1>, vector<32x128xf32>
    %91 = arith.addf %90, %72 : vector<32x128xf32>
    %c0_59 = arith.constant 0 : index
    %c0_60 = arith.constant 0 : index
    %92 = vector.load %arg10[%c0_59, %c0_60] : memref<32x128xf32, #tpu.memory_space<vmem>>, vector<32x128xf32>
    tpu.vector_store %arg10[%c0_59, %c0_60], %91 {strides = array<i32>} : memref<32x128xf32, #tpu.memory_space<vmem>>, vector<32x128xf32>,
    %c0_61 = arith.constant 0 : index
    %c0_62 = arith.constant 0 : index
    %93 = vector.load %arg10[%c0_61, %c0_62] : memref<32x128xf32, #tpu.memory_space<vmem>>, vector<32x128xf32>
    %c4 = arith.constant 4 : index
    %c0_63 = arith.constant 0 : index
    %c0_64 = arith.constant 0 : index
    %94 = vector.load %arg4[%c4, %c0_63, %c0_64] : memref<8x64x32xbf16, #tpu.memory_space<vmem>>, vector<1x64x32xbf16>
    %95 = vector.shape_cast %94 : vector<1x64x32xbf16> to vector<64x32xbf16>
    %96 = arith.truncf %93 : vector<32x128xf32> to vector<32x128xbf16>
    %cst_65 = arith.constant dense<0.000000e+00> : vector<64x128xf32>
    %97 = tpu.matmul %95, %96, %cst_65 {dimension_numbers = #tpu.dot_dimension_numbers<[1], [0], [0], [1], [0, 0, 1, 1], [], []>} : vector<64x32xbf16>, vector<32x128xbf16>, vector<64x128xf32> -> vector<64x128xf32>
    %98 = vector.extract_strided_slice %97 {offsets = [32, 16], sizes = [32, 112], strides = [1, 1]} : vector<64x128xf32> to vector<32x112xf32>
    %cst_66 = arith.constant 0.000000e+00 : f32
    %99 = vector.broadcast %cst_66 : f32 to vector<32x16xf32>
    %100 = tpu.concatenate %98, %99 in 1 : vector<32x112xf32>, vector<32x16xf32> -> vector<32x128xf32>
    %101 = vector.extract_strided_slice %97 {offsets = [0, 0], sizes = [32, 128], strides = [1, 1]} : vector<64x128xf32> to vector<32x128xf32>
    %102 = arith.addf %101, %100 : vector<32x128xf32>
    %c4_67 = arith.constant 4 : index
    %c0_68 = arith.constant 0 : index
    %c0_69 = arith.constant 0 : index
    %103 = vector.load %arg5[%c4_67, %c0_68, %c0_69] : memref<8x32x1xf32, #tpu.memory_space<vmem>>, vector<1x32x1xf32>
    %104 = vector.shape_cast %103 : vector<1x32x1xf32> to vector<32x1xf32>
    %105 = vector.broadcast %104 : vector<32x1xf32> to vector<32x128xf32>
    %106 = arith.addf %102, %105 : vector<32x128xf32>
    %cst_70 = arith.constant 0.000000e+00 : f32
    %107 = vector.broadcast %cst_70 : f32 to vector<32x128xf32>
    %108 = arith.cmpf ogt, %106, %107 : vector<32x128xf32>
    %cst_71 = arith.constant 2.000000e-01 : f32
    %109 = vector.broadcast %cst_71 : f32 to vector<32x128xf32>
    %110 = arith.mulf %109, %106 : vector<32x128xf32>
    %111 = arith.select %108, %106, %110 : vector<32x128xi1>, vector<32x128xf32>
    %112 = arith.addf %111, %93 : vector<32x128xf32>
    %c0_72 = arith.constant 0 : index
    %c0_73 = arith.constant 0 : index
    %113 = vector.load %arg10[%c0_72, %c0_73] : memref<32x128xf32, #tpu.memory_space<vmem>>, vector<32x128xf32>
    tpu.vector_store %arg10[%c0_72, %c0_73], %112 {strides = array<i32>} : memref<32x128xf32, #tpu.memory_space<vmem>>, vector<32x128xf32>,
    %c0_74 = arith.constant 0 : index
    %c0_75 = arith.constant 0 : index
    %114 = vector.load %arg10[%c0_74, %c0_75] : memref<32x128xf32, #tpu.memory_space<vmem>>, vector<32x128xf32>
    %c5 = arith.constant 5 : index
    %c0_76 = arith.constant 0 : index
    %c0_77 = arith.constant 0 : index
    %115 = vector.load %arg4[%c5, %c0_76, %c0_77] : memref<8x64x32xbf16, #tpu.memory_space<vmem>>, vector<1x64x32xbf16>
    %116 = vector.shape_cast %115 : vector<1x64x32xbf16> to vector<64x32xbf16>
    %117 = arith.truncf %114 : vector<32x128xf32> to vector<32x128xbf16>
    %cst_78 = arith.constant dense<0.000000e+00> : vector<64x128xf32>
    %118 = tpu.matmul %116, %117, %cst_78 {dimension_numbers = #tpu.dot_dimension_numbers<[1], [0], [0], [1], [0, 0, 1, 1], [], []>} : vector<64x32xbf16>, vector<32x128xbf16>, vector<64x128xf32> -> vector<64x128xf32>
    %119 = vector.extract_strided_slice %118 {offsets = [32, 32], sizes = [32, 96], strides = [1, 1]} : vector<64x128xf32> to vector<32x96xf32>
    %cst_79 = arith.constant 0.000000e+00 : f32
    %120 = vector.broadcast %cst_79 : f32 to vector<32x32xf32>
    %121 = tpu.concatenate %119, %120 in 1 : vector<32x96xf32>, vector<32x32xf32> -> vector<32x128xf32>
    %122 = vector.extract_strided_slice %118 {offsets = [0, 0], sizes = [32, 128], strides = [1, 1]} : vector<64x128xf32> to vector<32x128xf32>
    %123 = arith.addf %122, %121 : vector<32x128xf32>
    %c5_80 = arith.constant 5 : index
    %c0_81 = arith.constant 0 : index
    %c0_82 = arith.constant 0 : index
    %124 = vector.load %arg5[%c5_80, %c0_81, %c0_82] : memref<8x32x1xf32, #tpu.memory_space<vmem>>, vector<1x32x1xf32>
    %125 = vector.shape_cast %124 : vector<1x32x1xf32> to vector<32x1xf32>
    %126 = vector.broadcast %125 : vector<32x1xf32> to vector<32x128xf32>
    %127 = arith.addf %123, %126 : vector<32x128xf32>
    %cst_83 = arith.constant 0.000000e+00 : f32
    %128 = vector.broadcast %cst_83 : f32 to vector<32x128xf32>
    %129 = arith.cmpf ogt, %127, %128 : vector<32x128xf32>
    %cst_84 = arith.constant 2.000000e-01 : f32
    %130 = vector.broadcast %cst_84 : f32 to vector<32x128xf32>
    %131 = arith.mulf %130, %127 : vector<32x128xf32>
    %132 = arith.select %129, %127, %131 : vector<32x128xi1>, vector<32x128xf32>
    %133 = arith.addf %132, %114 : vector<32x128xf32>
    %c0_85 = arith.constant 0 : index
    %c0_86 = arith.constant 0 : index
    %134 = vector.load %arg10[%c0_85, %c0_86] : memref<32x128xf32, #tpu.memory_space<vmem>>, vector<32x128xf32>
    tpu.vector_store %arg10[%c0_85, %c0_86], %133 {strides = array<i32>} : memref<32x128xf32, #tpu.memory_space<vmem>>, vector<32x128xf32>,
    %c0_87 = arith.constant 0 : index
    %c0_88 = arith.constant 0 : index
    %135 = vector.load %arg10[%c0_87, %c0_88] : memref<32x128xf32, #tpu.memory_space<vmem>>, vector<32x128xf32>
    %c6 = arith.constant 6 : index
    %c0_89 = arith.constant 0 : index
    %c0_90 = arith.constant 0 : index
    %136 = vector.load %arg4[%c6, %c0_89, %c0_90] : memref<8x64x32xbf16, #tpu.memory_space<vmem>>, vector<1x64x32xbf16>
    %137 = vector.shape_cast %136 : vector<1x64x32xbf16> to vector<64x32xbf16>
    %138 = arith.truncf %135 : vector<32x128xf32> to vector<32x128xbf16>
    %cst_91 = arith.constant dense<0.000000e+00> : vector<64x128xf32>
    %139 = tpu.matmul %137, %138, %cst_91 {dimension_numbers = #tpu.dot_dimension_numbers<[1], [0], [0], [1], [0, 0, 1, 1], [], []>} : vector<64x32xbf16>, vector<32x128xbf16>, vector<64x128xf32> -> vector<64x128xf32>
    %140 = vector.extract_strided_slice %139 {offsets = [32, 64], sizes = [32, 64], strides = [1, 1]} : vector<64x128xf32> to vector<32x64xf32>
    %cst_92 = arith.constant 0.000000e+00 : f32
    %141 = vector.broadcast %cst_92 : f32 to vector<32x64xf32>
    %142 = tpu.concatenate %140, %141 in 1 : vector<32x64xf32>, vector<32x64xf32> -> vector<32x128xf32>
    %143 = vector.extract_strided_slice %139 {offsets = [0, 0], sizes = [32, 128], strides = [1, 1]} : vector<64x128xf32> to vector<32x128xf32>
    %144 = arith.addf %143, %142 : vector<32x128xf32>
    %c6_93 = arith.constant 6 : index
    %c0_94 = arith.constant 0 : index
    %c0_95 = arith.constant 0 : index
    %145 = vector.load %arg5[%c6_93, %c0_94, %c0_95] : memref<8x32x1xf32, #tpu.memory_space<vmem>>, vector<1x32x1xf32>
    %146 = vector.shape_cast %145 : vector<1x32x1xf32> to vector<32x1xf32>
    %147 = vector.broadcast %146 : vector<32x1xf32> to vector<32x128xf32>
    %148 = arith.addf %144, %147 : vector<32x128xf32>
    %cst_96 = arith.constant 0.000000e+00 : f32
    %149 = vector.broadcast %cst_96 : f32 to vector<32x128xf32>
    %150 = arith.cmpf ogt, %148, %149 : vector<32x128xf32>
    %cst_97 = arith.constant 2.000000e-01 : f32
    %151 = vector.broadcast %cst_97 : f32 to vector<32x128xf32>
    %152 = arith.mulf %151, %148 : vector<32x128xf32>
    %153 = arith.select %150, %148, %152 : vector<32x128xi1>, vector<32x128xf32>
    %154 = arith.addf %153, %135 : vector<32x128xf32>
    %c0_98 = arith.constant 0 : index
    %c0_99 = arith.constant 0 : index
    %155 = vector.load %arg10[%c0_98, %c0_99] : memref<32x128xf32, #tpu.memory_space<vmem>>, vector<32x128xf32>
    tpu.vector_store %arg10[%c0_98, %c0_99], %154 {strides = array<i32>} : memref<32x128xf32, #tpu.memory_space<vmem>>, vector<32x128xf32>,
    %c0_100 = arith.constant 0 : index
    %c0_101 = arith.constant 0 : index
    %156 = vector.load %arg10[%c0_100, %c0_101] : memref<32x128xf32, #tpu.memory_space<vmem>>, vector<32x128xf32>
    %c7 = arith.constant 7 : index
    %c0_102 = arith.constant 0 : index
    %c0_103 = arith.constant 0 : index
    %157 = vector.load %arg4[%c7, %c0_102, %c0_103] : memref<8x64x32xbf16, #tpu.memory_space<vmem>>, vector<1x64x32xbf16>
    %158 = vector.shape_cast %157 : vector<1x64x32xbf16> to vector<64x32xbf16>
    %159 = arith.truncf %156 : vector<32x128xf32> to vector<32x128xbf16>
    %cst_104 = arith.constant dense<0.000000e+00> : vector<64x128xf32>
    %160 = tpu.matmul %158, %159, %cst_104 {dimension_numbers = #tpu.dot_dimension_numbers<[1], [0], [0], [1], [0, 0, 1, 1], [], []>} : vector<64x32xbf16>, vector<32x128xbf16>, vector<64x128xf32> -> vector<64x128xf32>
    %161 = vector.extract_strided_slice %160 {offsets = [32, 1], sizes = [32, 127], strides = [1, 1]} : vector<64x128xf32> to vector<32x127xf32>
    %cst_105 = arith.constant 0.000000e+00 : f32
    %162 = vector.broadcast %cst_105 : f32 to vector<32x1xf32>
    %163 = tpu.concatenate %161, %162 in 1 : vector<32x127xf32>, vector<32x1xf32> -> vector<32x128xf32>
    %164 = vector.extract_strided_slice %160 {offsets = [0, 0], sizes = [32, 128], strides = [1, 1]} : vector<64x128xf32> to vector<32x128xf32>
    %165 = arith.addf %164, %163 : vector<32x128xf32>
    %c7_106 = arith.constant 7 : index
    %c0_107 = arith.constant 0 : index
    %c0_108 = arith.constant 0 : index
    %166 = vector.load %arg5[%c7_106, %c0_107, %c0_108] : memref<8x32x1xf32, #tpu.memory_space<vmem>>, vector<1x32x1xf32>
    %167 = vector.shape_cast %166 : vector<1x32x1xf32> to vector<32x1xf32>
    %168 = vector.broadcast %167 : vector<32x1xf32> to vector<32x128xf32>
    %169 = arith.addf %165, %168 : vector<32x128xf32>
    %cst_109 = arith.constant 0.000000e+00 : f32
    %170 = vector.broadcast %cst_109 : f32 to vector<32x128xf32>
    %171 = arith.cmpf ogt, %169, %170 : vector<32x128xf32>
    %cst_110 = arith.constant 2.000000e-01 : f32
    %172 = vector.broadcast %cst_110 : f32 to vector<32x128xf32>
    %173 = arith.mulf %172, %169 : vector<32x128xf32>
    %174 = arith.select %171, %169, %173 : vector<32x128xi1>, vector<32x128xf32>
    %175 = arith.addf %174, %156 : vector<32x128xf32>
    %c0_111 = arith.constant 0 : index
    %c0_112 = arith.constant 0 : index
    %176 = vector.load %arg10[%c0_111, %c0_112] : memref<32x128xf32, #tpu.memory_space<vmem>>, vector<32x128xf32>
    tpu.vector_store %arg10[%c0_111, %c0_112], %175 {strides = array<i32>} : memref<32x128xf32, #tpu.memory_space<vmem>>, vector<32x128xf32>,
    %c0_113 = arith.constant 0 : index
    %c0_114 = arith.constant 0 : index
    %177 = vector.load %arg6[%c0_113, %c0_114] : memref<24x32xbf16, #tpu.memory_space<vmem>>, vector<24x32xbf16>
    %c0_115 = arith.constant 0 : index
    %c0_116 = arith.constant 0 : index
    %178 = vector.load %arg10[%c0_115, %c0_116] : memref<32x128xf32, #tpu.memory_space<vmem>>, vector<32x128xf32>
    %179 = arith.truncf %178 : vector<32x128xf32> to vector<32x128xbf16>
    %cst_117 = arith.constant dense<0.000000e+00> : vector<24x128xf32>
    %180 = tpu.matmul %177, %179, %cst_117 {dimension_numbers = #tpu.dot_dimension_numbers<[1], [0], [0], [1], [0, 0, 1, 1], [], []>} : vector<24x32xbf16>, vector<32x128xbf16>, vector<24x128xf32> -> vector<24x128xf32>
    %c0_118 = arith.constant 0 : index
    %c0_119 = arith.constant 0 : index
    %181 = vector.load %arg7[%c0_118, %c0_119] : memref<24x1xf32, #tpu.memory_space<vmem>>, vector<24x1xf32>
    %182 = vector.broadcast %181 : vector<24x1xf32> to vector<24x128xf32>
    %183 = arith.addf %180, %182 : vector<24x128xf32>
    %184 = vector.extract_strided_slice %183 {offsets = [0, 0], sizes = [16, 128], strides = [1, 1]} : vector<24x128xf32> to vector<16x128xf32>
    %185 = vector.extract_strided_slice %183 {offsets = [16, 0], sizes = [1, 128], strides = [1, 1]} : vector<24x128xf32> to vector<1x128xf32>
    %186 = vector.extract_strided_slice %8 {offsets = [0, 0], sizes = [1, 128], strides = [1, 1]} : vector<32x128xi32> to vector<1x128xi32>
    %cst_120 = arith.constant 0.000000e+00 : f32
    %187 = vector.broadcast %cst_120 : f32 to vector<1x128xf32>
    %188 = arith.maximumf %185, %187 : vector<1x128xf32>
    %c64_i32 = arith.constant 64 : i32
    %189 = vector.broadcast %c64_i32 : i32 to vector<1x128xi32>
    %190 = arith.cmpi slt, %186, %189 : vector<1x128xi32>
    %cst_121 = arith.constant 0.000000e+00 : f32
    %191 = vector.broadcast %cst_121 : f32 to vector<1x128xf32>
    %192 = arith.select %190, %188, %191 : vector<1x128xi1>, vector<1x128xf32>
    %cst_122 = arith.constant dense<0xFF800000> : vector<1xf32>
    %193 = vector.multi_reduction <maximumf>, %192, %cst_122 [1] : vector<1x128xf32> to vector<1xf32>
    %194 = vector.shape_cast %193 : vector<1xf32> to vector<1x1xf32>
    %195 = vector.broadcast %194 : vector<1x1xf32> to vector<1x128xf32>
    %196 = arith.cmpf oeq, %192, %195 : vector<1x128xf32>
    %c128_i32 = arith.constant 128 : i32
    %197 = vector.broadcast %c128_i32 : i32 to vector<1x128xi32>
    %198 = arith.select %196, %186, %197 : vector<1x128xi1>, vector<1x128xi32>
    %cst_123 = arith.constant dense<2147483647> : vector<1xi32>
    %199 = vector.multi_reduction <minsi>, %198, %cst_123 [1] : vector<1x128xi32> to vector<1xi32>
    %200 = vector.shape_cast %199 : vector<1xi32> to vector<1x1xi32>
    %201 = vector.broadcast %200 : vector<1x1xi32> to vector<1x128xi32>
    %202 = arith.cmpi eq, %186, %201 : vector<1x128xi32>
    %203 = arith.extui %202 : vector<1x128xi1> to vector<1x128xi32>
    %204 = arith.sitofp %203 : vector<1x128xi32> to vector<1x128xf32>
    %205 = vector.broadcast %194 : vector<1x1xf32> to vector<1x128xf32>
    %206 = arith.mulf %204, %205 : vector<1x128xf32>
    %c0_124 = arith.constant 0 : index
    %c0_125 = arith.constant 0 : index
    %c0_126 = arith.constant 0 : index
    %207 = vector.load %arg9[%c0_124, %c0_125, %c0_126] : memref<1x1x128xf32, #tpu.memory_space<vmem>>, vector<1x1x128xf32>
    %208 = vector.shape_cast %207 : vector<1x1x128xf32> to vector<1x128xf32>
    %209 = vector.shape_cast %206 : vector<1x128xf32> to vector<1x1x128xf32>
    tpu.vector_store %arg9[%c0_124, %c0_125, %c0_126], %209 {strides = array<i32>} : memref<1x1x128xf32, #tpu.memory_space<vmem>>, vector<1x1x128xf32>,
    %cst_127 = arith.constant dense<0.000000e+00> : vector<1x16xf32>
    %210 = tpu.matmul %204, %184, %cst_127 {dimension_numbers = #tpu.dot_dimension_numbers<[1], [1], [0], [0], [0, 0, 1, 0], [], []>} : vector<1x128xf32>, vector<16x128xf32>, vector<1x16xf32> -> vector<1x16xf32>
    %c0_128 = arith.constant 0 : index
    %c0_129 = arith.constant 0 : index
    %c0_130 = arith.constant 0 : index
    %211 = vector.load %arg8[%c0_128, %c0_129, %c0_130] : memref<1x1x16xf32, #tpu.memory_space<vmem>>, vector<1x1x16xf32>
    %212 = vector.shape_cast %211 : vector<1x1x16xf32> to vector<1x16xf32>
    %213 = vector.shape_cast %210 : vector<1x16xf32> to vector<1x1x16xf32>
    tpu.vector_store %arg8[%c0_128, %c0_129, %c0_130], %213 {strides = array<i32>} : memref<1x1x16xf32, #tpu.memory_space<vmem>>, vector<1x1x16xf32>,
    return
  }
  func.func @transform_0(%arg0: i32) -> (i32, i32, i32) {
    %c0_i32 = arith.constant 0 : i32
    %c0_i32_0 = arith.constant 0 : i32
    %c0_i32_1 = arith.constant 0 : i32
    return %arg0, %c0_i32, %c0_i32_0 : i32, i32, i32
  }
  func.func @transform_1(%arg0: i32) -> (i32, i32) {
    %c0_i32 = arith.constant 0 : i32
    %c0_i32_0 = arith.constant 0 : i32
    %c0_i32_1 = arith.constant 0 : i32
    return %c0_i32, %c0_i32_0 : i32, i32
  }
  func.func @transform_2(%arg0: i32) -> (i32, i32) {
    %c0_i32 = arith.constant 0 : i32
    %c0_i32_0 = arith.constant 0 : i32
    %c0_i32_1 = arith.constant 0 : i32
    return %c0_i32, %c0_i32_0 : i32, i32
  }
  func.func @transform_3(%arg0: i32) -> (i32, i32, i32) {
    %c0_i32 = arith.constant 0 : i32
    %c0_i32_0 = arith.constant 0 : i32
    %c0_i32_1 = arith.constant 0 : i32
    %c0_i32_2 = arith.constant 0 : i32
    return %c0_i32, %c0_i32_0, %c0_i32_1 : i32, i32, i32
  }
  func.func @transform_4(%arg0: i32) -> (i32, i32, i32) {
    %c0_i32 = arith.constant 0 : i32
    %c0_i32_0 = arith.constant 0 : i32
    %c0_i32_1 = arith.constant 0 : i32
    %c0_i32_2 = arith.constant 0 : i32
    return %c0_i32, %c0_i32_0, %c0_i32_1 : i32, i32, i32
  }
  func.func @transform_5(%arg0: i32) -> (i32, i32) {
    %c0_i32 = arith.constant 0 : i32
    %c0_i32_0 = arith.constant 0 : i32
    %c0_i32_1 = arith.constant 0 : i32
    return %c0_i32, %c0_i32_0 : i32, i32
  }
  func.func @transform_6(%arg0: i32) -> (i32, i32) {
    %c0_i32 = arith.constant 0 : i32
    %c0_i32_0 = arith.constant 0 : i32
    %c0_i32_1 = arith.constant 0 : i32
    return %c0_i32, %c0_i32_0 : i32, i32
  }
  func.func @transform_7(%arg0: i32) -> (i32, i32, i32) {
    %c0_i32 = arith.constant 0 : i32
    %c0_i32_0 = arith.constant 0 : i32
    %c0_i32_1 = arith.constant 0 : i32
    return %arg0, %c0_i32, %c0_i32_0 : i32, i32, i32
  }
  func.func @transform_8(%arg0: i32) -> (i32, i32, i32) {
    %c0_i32 = arith.constant 0 : i32
    %c0_i32_0 = arith.constant 0 : i32
    %c0_i32_1 = arith.constant 0 : i32
    return %arg0, %c0_i32, %c0_i32_0 : i32, i32, i32
  }
}

</mosaic_0001>

<bundles_post_ra>
// kernel: tpu_custom_call.1
= control target key start
LH: loop header
LB: loop body
LE: loop exit
PB: predicated region body
PF: predicated region fallthrough
CT: control target
= control target key end

     0   :  { %14 = vsyncpa [#allocation4], 0  ;;  %s3388_s0 = inlined_call_operand.vmem [shape: bf16[2,64,128], index: 0, kind: input, shape index: {}]   ;;  %s3389_s1 = inlined_call_operand.vmem [shape: bf16[32,64], index: 1, kind: input, shape index: {}]   ;;  %s3390_s2 = inlined_call_operand.vmem [shape: f32[32,1], index: 2, kind: input, shape index: {}]   ;;  %s3391_s3 = inlined_call_operand.vmem [shape: bf16[8,64,32], index: 3, kind: input, shape index: {}]   ;;  %s3392_s4 = inlined_call_operand.vmem [shape: f32[8,32,1], index: 4, kind: input, shape index: {}]   ;;  %s3393_s5 = inlined_call_operand.vmem [shape: bf16[24,32], index: 5, kind: input, shape index: {}]   ;;  %s3394_s6 = inlined_call_operand.vmem [shape: f32[24,1], index: 6, kind: input, shape index: {}]   ;;  %s3395_s7 = inlined_call_operand.hbm [shape: f32[2,1,16], index: 7, kind: output, shape index: {0}]   ;;  %s3396_s8 = inlined_call_operand.hbm [shape: f32[2,1,128], index: 8, kind: output, shape index: {1}]  }
   0x1   :  { %16 = vsyncpa [#allocation4 + $0x1], 0 }
   0x2   :  { %17 = vsyncpa [#allocation6], 0 }
   0x3   :  { %19 = vsyncpa [#allocation6 + $0x1], 0  ;;  %s2847_s27 = smov 0   ;;  %s2849_s28 = smov 0  }
   0x4   :  { %s2851_s29 = smov 0   ;;  %s2853_s30 = smov 0  }
   0x5 LB: > { %s2868_s9 = sadd.s32 4294967295, %s2786_s30   ;;  %s2234_s10 = sadd.s32 4294967294, %s2786_s30   ;;  %s2786_s30 = sphi %s2853_s30, %s3402_s30   ;;  %s2782_s29 = sphi %s2851_s29, %s3401_s29   ;;  %s2778_s28 = sphi %s2849_s28, %s3400_s28   ;;  %s2774_s27 = sphi %s2847_s27, %s3399_s27  }
   0x6   : > { %s2872_s11 = sadd.s32 1, %s2786_s30   ;;  %s184_s12 = sadd.s32 1, %s2782_s29 }
   0x7   : > { %s181_s13 = ssub.s32 %s2786_s30, %s2872_s11  ;;  %p194_p0 = scmp.ne.s32.totalorder %s2782_s29, %s2778_s28 }
   0x8   : > { %p182_p1 = scmp.eq.s32.totalorder %s181_s13, 0  ;;  %p195_p2 = scmp.eq.s32.totalorder %s2868_s9, 1 }
   0x9   : > { %p200_p3 = scmp.ne.s32.totalorder %s2778_s28, %s2774_s27  ;;  %p201_p4 = scmp.eq.s32.totalorder %s2234_s10, 1 }
   0xa   : > { %s2883_s14 = scalar_select %p182_p1, %s2782_s29, %s184_s12  }
   0xb   : > { %p2885_p5 = por %p195_p2, %p194_p0  ;;  %p2889_p6 = por %p201_p4, %p200_p3 }
   0xc   : > { %p2237_p7 = scmp.ge.s32.totalorder %s2786_s30, 1  ;;  %p271_p8 = scmp.lt.s32.totalorder %s2786_s30, 3 }
   0xe   : > { %p272_p9 = pnand %p2237_p7, %p271_p8 }
   0xf   : > { %p308_p10 = scmp.lt.s32.totalorder (!%p272_p9), %s2868_s9, 1  ;;  %v2656_v0 = vld [vmem:[%s3389_s1] sm:$0xff] (!%p272_p9)   ;;  %vm384_vm0 = vcmask (!%p272_p9), 523264   ;;  %v328_v2 = vld [vmem:[%s3390_s2 + $0x10] sm:$0xff] (!%p272_p9)  ;;  %v2788_v3 = vmov (!%p272_p9), 0   ;;  %v327_v4 = vld [vmem:[%s3390_s2 + $0x8] sm:$0xff] (!%p272_p9) }
  0x10   : > { %275 = sbr.rel (%p272_p9) target bundleno = 4033 (0xfc1), region = 48  ;;  %2476 = vmatprep.mubr.msk.bf16.mxu0 (!%p272_p9), %vm384_vm0, %v2656_v0  ;;  %v326_v1 = vld [vmem:[%s3390_s2] sm:$0xff] (!%p272_p9)  ;;  %2650 = vset.pattern.permute.xlu0 (!%p272_p9), %v2788_v3  ;;  %v329_v5 = vld [vmem:[%s3390_s2 + $0x18] sm:$0xff] (!%p272_p9)  ;;  %v584_v9 = vld [vmem:[%s3392_s4 + $0x8] sm:$0xff] (!%p272_p9)  ;;  %vm480_vm1 = vcmask (!%p272_p9), 261120   ;;  %s2789_s25 = smov (!%p272_p9), 127  }
  0x11   : > { %2651 = vset.pattern.permute.xlu1 (!%p272_p9), %v2788_v3  ;;  %332 = vperm.xlu0 (!%p272_p9), %2650, %v326_v1   ;;  %v583_v8 = vld [vmem:[%s3392_s4] sm:$0xff] (!%p272_p9)  ;;  %v585_v11 = vld [vmem:[%s3392_s4 + $0x10] sm:$0xff] (!%p272_p9)  ;;  %v586_v13 = vld [vmem:[%s3392_s4 + $0x18] sm:$0xff] (!%p272_p9)  ;;  %vm574_vm2 = vcmask (!%p272_p9), 1039360   ;;  %s2790_s13 = smov (!%p272_p9), 126   ;;  %vm759_vm7 = vcmask (!%p272_p9), 1031168  }
  0x12   : > { %342 = vperm.xlu1 (!%p272_p9), %2651, %v328_v2   ;;  %v2657_v14 = vld [vmem:[%s3389_s1 + $0x8] sm:$0xff] (!%p272_p9)   ;;  %v2658_v15 = vld [vmem:[%s3391_s3] sm:$0xff] (!%p272_p9)   ;;  %v2660_v31 = vld [vmem:[%s3391_s3 + $0x10] sm:$0xff] (!%p272_p9)   ;;  %vm945_vm12 = vcmask (!%p272_p9), 1014784   ;;  %s2792_s10 = smov (!%p272_p9), 120   ;;  %s2793_s20 = smov (!%p272_p9), 112  }
  0x13   : > { %2484 = vmatprep.mubr.msk.bf16.mxu1 (!%p272_p9), %vm480_vm1, %v2658_v15  ;;  %v2659_v30 = vld [vmem:[%s3391_s3 + $0x8] sm:$0xff] (!%p272_p9)   ;;  %v2661_v32 = vld [vmem:[%s3391_s3 + $0x18] sm:$0xff] (!%p272_p9)   ;;  %v2272_v41 = vld [vmem:[%s3392_s4 + $0x20] sm:$0xff] (!%p272_p9)  ;;  %s2795_s17 = smov (!%p272_p9), 64   ;;  %s2800_s12 = smov (!%p272_p9), [#allocation5]  }
  0x14   : > { %v2273_v42 = vld [vmem:[%s3392_s4 + $0x28] sm:$0xff] (!%p272_p9)  ;;  %v2662_v43 = vld [vmem:[%s3391_s3 + $0x20] sm:$0xff] (!%p272_p9)   ;;  %v2274_v44 = vld [vmem:[%s3392_s4 + $0x30] sm:$0xff] (!%p272_p9) }
  0x15   : > { %337 = vperm.xlu0 (!%p272_p9), %2650, %v327_v4   ;;  %v2275_v45 = vld [vmem:[%s3392_s4 + $0x38] sm:$0xff] (!%p272_p9) }
  0x16   : > { %347 = vperm.xlu1 (!%p272_p9), %2651, %v329_v5  }
  0x17   : > { %s309_s19 = scalar_select %p308_p10, %s2868_s9, 1 }
  0x19   : > { %s2406_s24 = sshll.u32 %s309_s19, 5  ;;  %589 = vperm.xlu0 %2650, %v583_v8   ;;  %s2791_s19 = smov 124  }
  0x1a   : > { %s312_s18 = scalar_lea.vmem %s3388_s0, %s2406_s24  ;;  %594 = vperm.xlu1 %2651, %v584_v9   ;;  %s2794_s24 = smov 96  }
  0x1b   : > { %v2652_v6 = vld [vmem:[%s312_s18] sm:$0xff]   ;;  %v2653_v7 = vld [vmem:[%s312_s18 + $0x8] sm:$0xff]   ;;  %v2654_v10 = vld [vmem:[%s312_s18 + $0x10] sm:$0xff]  }
  0x1c   : > { %2468 = vmatprep.subr.bf16.mxu0 %v2652_v6  ;;  %v2655_v12 = vld [vmem:[%s312_s18 + $0x18] sm:$0xff]  }
  0x1d   : > { %2469 = vmatpush3.bf16.msra.mxu0 %v2652_v6  ;;  %599 = vperm.xlu0 %2650, %v585_v11  }
  0x1e   : > { %2470 = vmatprep.subr.bf16.mxu0 %v2653_v7  ;;  %604 = vperm.xlu1 %2651, %v586_v13  }
  0x21   : > { %2471 = vmatpush3.bf16.msra.mxu0 %v2653_v7 }
  0x22   : > { %2472 = vmatprep.subr.bf16.mxu0 %v2654_v10 }
  0x25   : > { %2473 = vmatpush3.bf16.msra.mxu0 %v2654_v10 }
  0x26   : > { %2474 = vmatprep.subr.bf16.mxu0 %v2655_v12 }
  0x29   : > { %2475 = vmatpush3.bf16.msra.mxu0 %v2655_v12 }
  0x2c   : > { %2477 = vmatmul.mubr.msk.bf16.vlgmr.msra.gmra.mrb[0].mxu0 %vm384_vm0, %v2657_v14 }
  0x2d   : > { %2496 = vmatprep.mubr.msk.bf16.mxu0 %vm480_vm1, %v2662_v43 }
  0x90   : > { %v333_v16 = vpop.permute.xlu0 %332 }
  0x91   : > { %v343_v17 = vpop.permute.xlu1 %342 }
  0x94   : > { %v338_v20 = vpop.permute.xlu0 %337 }
  0x95   : > { %v348_v22 = vpop.permute.xlu1 %347 }
  0x98   : > { %v590_v46 = vpop.permute.xlu0 %589 }
  0x99   : > { %v595_v47 = vpop.permute.xlu1 %594 }
  0x9c   : > { %v600_v48 = vpop.permute.xlu0 %599 }
  0x9d   : > { %v605_v49 = vpop.permute.xlu1 %604 }
  0xff   : > { %v2478_v18 = vpop.f32.mrb[0].mxu0 }
 0x100   : > { %v425_v19 = vpop.f32.mrb[1].mxu0  ;;  %v2942_v27 = vadd.f32 %v2478_v18, %v343_v17  ;;  %v2664_v17 = vld [vmem:[%s3391_s3 + $0x30] sm:$0xff]   ;;  %v2665_v18 = vld [vmem:[%s3391_s3 + $0x38] sm:$0xff]  }
 0x101   : > { %v2479_v21 = vpop.f32.mrb[2].mxu0  ;;  %v2936_v24 = vadd.f32 %v425_v19, %v333_v16  ;;  %v2663_v16 = vld [vmem:[%s3391_s3 + $0x28] sm:$0xff]  }
 0x102   : > { %v428_v23 = vpop.f32.mrb[3].mxu0  ;;  %v2938_v25 = vadd.f32 %v2479_v21, %v348_v22 }
 0x103   : > { %v2940_v26 = vadd.f32 %v428_v23, %v338_v20 }
 0x104   : > { %v459_v29 = vpack.c.bf16 %v2938_v25, %v2942_v27 }
 0x105   : > { %v458_v28 = vpack.c.bf16 %v2940_v26, %v2936_v24 }
 0x107   : > { %2480 = vmatprep.subr.bf16.mxu1 %v458_v28 }
 0x108   : > { %2481 = vmatpush3.bf16.msra.mxu1 %v458_v28  ;;  %v2293_v28 = vld [vmem:[%s3392_s4 + $0x48] sm:$0xff] }
 0x109   : > { %2482 = vmatprep.subr.bf16.mxu1 %v459_v29 }
 0x10c   : > { %2483 = vmatpush3.bf16.msra.mxu1 %v459_v29  ;;  %v2666_v29 = vld [vmem:[%s3391_s3 + $0x40] sm:$0xff]  }
 0x10f   : > { %2485 = vmatmul.mubr.msk.bf16.vlgmr.msra.gmra.mrb[0].mxu1 %vm480_vm1, %v2659_v30  ;;  %v2294_v30 = vld [vmem:[%s3392_s4 + $0x50] sm:$0xff] }
 0x110   : > { %2488 = vmatprep.mubr.msk.bf16.mxu1 %vm480_vm1, %v2660_v31  ;;  %v2295_v31 = vld [vmem:[%s3392_s4 + $0x58] sm:$0xff] }
 0x117   : > { %2489 = vmatmul.mubr.msk.bf16.gmra.mrb[4].mxu1 %vm480_vm1, %v2661_v32 }
 0x118   : > { %2508 = vmatprep.mubr.msk.bf16.mxu1 %vm480_vm1, %v2666_v29 }
 0x1e2   : > { %v2486_v33 = vpop.f32.mrb[0].mxu1 }
 0x1e3   : > { %v527_v34 = vpop.f32.mrb[1].mxu1 }
 0x1e4   : > { %v2487_v35 = vpop.f32.mrb[2].mxu1 }
 0x1e5   : > { %v530_v36 = vpop.f32.mrb[3].mxu1 }
 0x1ea   : > { %v2490_v37 = vpop.f32.mrb[4].mxu1 }
 0x1eb   : > { %v543_v38 = vpop.f32.mrb[5].mxu1 }
 0x1ec   : > { %562 = vrot.lane.b32.xlu0 %v543_v38, %s2789_s25  ;;  %v2491_v39 = vpop.f32.mrb[6].mxu1 }
 0x1ed   : > { %v546_v40 = vpop.f32.mrb[7].mxu1 }
 0x1ee   : > { %564 = vrot.lane.b32.xlu1 %v546_v40, %s2789_s25 }
 0x1f0   : > { %566 = vrot.lane.b32.xlu0 %v2490_v37, %s2789_s25 }
 0x1f2   : > { %568 = vrot.lane.b32.xlu1 %v2491_v39, %s2789_s25 }
 0x1f4   : > { %775 = vperm.xlu0 %2650, %v2272_v41  }
 0x1f6   : > { %780 = vperm.xlu1 %2651, %v2273_v42  }
 0x1f8   : > { %785 = vperm.xlu0 %2650, %v2274_v44  }
 0x1fa   : > { %790 = vperm.xlu1 %2651, %v2275_v45  }
 0x25e   : > { %v563_v50 = vpop.permute.xlu0 %562 }
 0x25f   : > { %v575_v51 = vsel %vm574_vm2, %v563_v50, 0.0 }
 0x260   : > { %v579_v52 = vadd.f32 %v575_v51, %v527_v34  ;;  %v565_v53 = vpop.permute.xlu1 %564 }
 0x261   : > { %v576_v54 = vsel %vm574_vm2, %v565_v53, 0.0 }
 0x262   : > { %v607_v55 = vadd.f32 %v590_v46, %v579_v52  ;;  %v580_v56 = vadd.f32 %v576_v54, %v530_v36  ;;  %v567_v57 = vpop.permute.xlu0 %566 }
 0x263   : > { %v577_v58 = vsel %vm574_vm2, %v567_v57, 0.0 }
 0x264   : > { %vm611_vm3 = vcmp.gt.f32.partialorder %v607_v55, 0.0  ;;  %v615_v59 = vmul.f32 0.2, %v607_v55  ;;  %v608_v60 = vadd.f32 %v595_v47, %v580_v56  ;;  %v581_v61 = vadd.f32 %v2486_v33, %v577_v58  ;;  %v569_v62 = vpop.permute.xlu1 %568 }
 0x265   : > { %v578_v63 = vsel %vm574_vm2, %v569_v62, 0.0 }
 0x266   : > { %vm612_vm4 = vcmp.gt.f32.partialorder %v608_v60, 0.0  ;;  %v616_v0 = vmul.f32 0.2, %v608_v60  ;;  %v609_v1 = vadd.f32 %v600_v48, %v581_v61  ;;  %v582_v2 = vadd.f32 %v2487_v35, %v578_v63 }
 0x267   : > { %v619_v3 = vsel %vm611_vm3, %v607_v55, %v615_v59 }
 0x268   : > { %vm613_vm5 = vcmp.gt.f32.partialorder %v609_v1, 0.0  ;;  %v617_v4 = vmul.f32 0.2, %v609_v1  ;;  %v610_v5 = vadd.f32 %v605_v49, %v582_v2  ;;  %v620_v6 = vsel %vm612_vm4, %v608_v60, %v616_v0  ;;  %v2667_v2 = vld [vmem:[%s3391_s3 + $0x48] sm:$0xff]  }
 0x269   : > { %v2985_v7 = vadd.f32 %v619_v3, %v2936_v24  ;;  %v2988_v8 = vadd.f32 %v620_v6, %v2940_v26  ;;  %v2668_v3 = vld [vmem:[%s3391_s3 + $0x50] sm:$0xff]   ;;  %vm1131_vm4 = vcmask 982016  }
 0x26a   : > { %vm614_vm6 = vcmp.gt.f32.partialorder %v610_v5, 0.0  ;;  %v618_v9 = vmul.f32 0.2, %v610_v5  ;;  %v621_v10 = vsel %vm613_vm5, %v609_v1, %v617_v4  ;;  %v2669_v4 = vld [vmem:[%s3391_s3 + $0x58] sm:$0xff]  }
 0x26b   : > { %v644_v11 = vpack.c.bf16 %v2988_v8, %v2985_v7  ;;  %v2993_v13 = vadd.f32 %v621_v10, %v2942_v27  ;;  %v2292_v27 = vld [vmem:[%s3392_s4 + $0x40] sm:$0xff] }
 0x26c   : > { %v622_v12 = vsel %vm614_vm6, %v610_v5, %v618_v9 }
 0x26d   : > { %2492 = vmatprep.subr.bf16.mxu0 %v644_v11  ;;  %v2996_v14 = vadd.f32 %v622_v12, %v2938_v25 }
 0x26e   : > { %2493 = vmatpush3.bf16.msra.mxu0 %v644_v11 }
 0x26f   : > { %v645_v15 = vpack.c.bf16 %v2996_v14, %v2993_v13 }
 0x271   : > { %2494 = vmatprep.subr.bf16.mxu0 %v645_v15 }
 0x272   : > { %2495 = vmatpush3.bf16.msra.mxu0 %v645_v15  ;;  %v2670_v15 = vld [vmem:[%s3391_s3 + $0x60] sm:$0xff]  }
 0x273   : > { %v776_v32 = vpop.permute.xlu0 %775 }
 0x275   : > { %2497 = vmatmul.mubr.msk.bf16.vlgmr.msra.gmra.mrb[4].mxu0 %vm480_vm1, %v2663_v16  ;;  %v781_v33 = vpop.permute.xlu1 %780  ;;  %v2314_v16 = vld [vmem:[%s3392_s4 + $0x70] sm:$0xff] }
 0x276   : > { %2500 = vmatprep.mubr.msk.bf16.mxu0 %vm480_vm1, %v2664_v17  ;;  %v2315_v17 = vld [vmem:[%s3392_s4 + $0x78] sm:$0xff] }
 0x277   : > { %v786_v34 = vpop.permute.xlu0 %785 }
 0x279   : > { %v791_v35 = vpop.permute.xlu1 %790 }
 0x27d   : > { %2501 = vmatmul.mubr.msk.bf16.gmra.mrb[8].mxu0 %vm480_vm1, %v2665_v18 }
 0x27e   : > { %2520 = vmatprep.mubr.msk.bf16.mxu0 %vm480_vm1, %v2670_v15 }
 0x348   : > { %v2498_v19 = vpop.f32.mrb[4].mxu0 }
 0x349   : > { %v712_v20 = vpop.f32.mrb[5].mxu0 }
 0x34a   : > { %v2499_v21 = vpop.f32.mrb[6].mxu0 }
 0x34b   : > { %v715_v22 = vpop.f32.mrb[7].mxu0 }
 0x350   : > { %v2502_v23 = vpop.f32.mrb[8].mxu0 }
 0x351   : > { %v728_v24 = vpop.f32.mrb[9].mxu0 }
 0x352   : > { %747 = vrot.lane.b32.xlu0 %v728_v24, %s2790_s13  ;;  %v2503_v25 = vpop.f32.mrb[10].mxu0 }
 0x353   : > { %v731_v26 = vpop.f32.mrb[11].mxu0 }
 0x354   : > { %749 = vrot.lane.b32.xlu1 %v731_v26, %s2790_s13 }
 0x356   : > { %751 = vrot.lane.b32.xlu0 %v2502_v23, %s2790_s13 }
 0x358   : > { %753 = vrot.lane.b32.xlu1 %v2503_v25, %s2790_s13  ;;  %s2696_s13 = sshll.u32 %s2800_s12, 4  ;;  %s2697_s13 = int_to_ptr.vmem [resolvable:$false] %s2696_s13 }
 0x35a   : > { %961 = vperm.xlu0 %2650, %v2292_v27  }
 0x35c   : > { %966 = vperm.xlu1 %2651, %v2293_v28  }
 0x35e   : > { %971 = vperm.xlu0 %2650, %v2294_v30  }
 0x360   : > { %976 = vperm.xlu1 %2651, %v2295_v31  }
 0x3c4   : > { %v748_v36 = vpop.permute.xlu0 %747 }
 0x3c5   : > { %v760_v37 = vsel %vm759_vm7, %v748_v36, 0.0 }
 0x3c6   : > { %v764_v38 = vadd.f32 %v760_v37, %v712_v20  ;;  %v750_v39 = vpop.permute.xlu1 %749 }
 0x3c7   : > { %v761_v40 = vsel %vm759_vm7, %v750_v39, 0.0 }
 0x3c8   : > { %v793_v41 = vadd.f32 %v776_v32, %v764_v38  ;;  %v765_v42 = vadd.f32 %v761_v40, %v715_v22  ;;  %v752_v43 = vpop.permute.xlu0 %751 }
 0x3c9   : > { %v762_v44 = vsel %vm759_vm7, %v752_v43, 0.0 }
 0x3ca   : > { %vm797_vm8 = vcmp.gt.f32.partialorder %v793_v41, 0.0  ;;  %v801_v45 = vmul.f32 0.2, %v793_v41  ;;  %v794_v46 = vadd.f32 %v781_v33, %v765_v42  ;;  %v766_v47 = vadd.f32 %v2498_v19, %v762_v44  ;;  %v754_v48 = vpop.permute.xlu1 %753 }
 0x3cb   : > { %v763_v49 = vsel %vm759_vm7, %v754_v48, 0.0 }
 0x3cc   : > { %vm798_vm9 = vcmp.gt.f32.partialorder %v794_v46, 0.0  ;;  %v802_v50 = vmul.f32 0.2, %v794_v46  ;;  %v795_v51 = vadd.f32 %v786_v34, %v766_v47  ;;  %v767_v52 = vadd.f32 %v2499_v21, %v763_v49 }
 0x3cd   : > { %v805_v53 = vsel %vm797_vm8, %v793_v41, %v801_v45 }
 0x3ce   : > { %vm799_vm10 = vcmp.gt.f32.partialorder %v795_v51, 0.0  ;;  %v803_v54 = vmul.f32 0.2, %v795_v51  ;;  %v796_v55 = vadd.f32 %v791_v35, %v767_v52  ;;  %v806_v56 = vsel %vm798_vm9, %v794_v46, %v802_v50  ;;  %v2671_v52 = vld [vmem:[%s3391_s3 + $0x68] sm:$0xff]  }
 0x3cf   : > { %v3029_v57 = vadd.f32 %v805_v53, %v2985_v7  ;;  %v3032_v58 = vadd.f32 %v806_v56, %v2988_v8  ;;  %v2672_v53 = vld [vmem:[%s3391_s3 + $0x70] sm:$0xff]   ;;  %vm1317_vm9 = vcmask 916480  }
 0x3d0   : > { %vm800_vm11 = vcmp.gt.f32.partialorder %v796_v55, 0.0  ;;  %v804_v59 = vmul.f32 0.2, %v796_v55  ;;  %v807_v60 = vsel %vm799_vm10, %v795_v51, %v803_v54  ;;  %v2673_v54 = vld [vmem:[%s3391_s3 + $0x78] sm:$0xff]  }
 0x3d1   : > { %v830_v61 = vpack.c.bf16 %v3032_v58, %v3029_v57  ;;  %v3037_v63 = vadd.f32 %v807_v60, %v2993_v13  ;;  %v2312_v13 = vld [vmem:[%s3392_s4 + $0x60] sm:$0xff] }
 0x3d2   : > { %v808_v62 = vsel %vm800_vm11, %v796_v55, %v804_v59 }
 0x3d3   : > { %2504 = vmatprep.subr.bf16.mxu1 %v830_v61  ;;  %v3040_v0 = vadd.f32 %v808_v62, %v2996_v14  ;;  %v2313_v14 = vld [vmem:[%s3392_s4 + $0x68] sm:$0xff] }
 0x3d4   : > { %2505 = vmatpush3.bf16.msra.mxu1 %v830_v61 }
 0x3d5   : > { %v831_v1 = vpack.c.bf16 %v3040_v0, %v3037_v63 }
 0x3d7   : > { %2506 = vmatprep.subr.bf16.mxu1 %v831_v1 }
 0x3d8   : > { %2507 = vmatpush3.bf16.msra.mxu1 %v831_v1  ;;  %v2674_v1 = vld [vmem:[%s3391_s3 + $0x80] sm:$0xff]  }
 0x3d9   : > { %v962_v18 = vpop.permute.xlu0 %961 }
 0x3db   : > { %2509 = vmatmul.mubr.msk.bf16.vlgmr.msra.gmra.mrb[8].mxu1 %vm480_vm1, %v2667_v2  ;;  %v967_v19 = vpop.permute.xlu1 %966  ;;  %v2334_v2 = vld [vmem:[%s3392_s4 + $0x90] sm:$0xff] }
 0x3dc   : > { %2512 = vmatprep.mubr.msk.bf16.mxu1 %vm480_vm1, %v2668_v3  ;;  %v2335_v3 = vld [vmem:[%s3392_s4 + $0x98] sm:$0xff] }
 0x3dd   : > { %v972_v20 = vpop.permute.xlu0 %971 }
 0x3df   : > { %v977_v21 = vpop.permute.xlu1 %976 }
 0x3e3   : > { %2513 = vmatmul.mubr.msk.bf16.gmra.mrb[12].mxu1 %vm480_vm1, %v2669_v4 }
 0x3e4   : > { %2532 = vmatprep.mubr.msk.bf16.mxu1 %vm480_vm1, %v2674_v1 }
 0x4ae   : > { %v2510_v5 = vpop.f32.mrb[8].mxu1 }
 0x4af   : > { %v898_v6 = vpop.f32.mrb[9].mxu1 }
 0x4b0   : > { %v2511_v7 = vpop.f32.mrb[10].mxu1 }
 0x4b1   : > { %v901_v8 = vpop.f32.mrb[11].mxu1 }
 0x4b6   : > { %v2514_v9 = vpop.f32.mrb[12].mxu1 }
 0x4b7   : > { %v914_v10 = vpop.f32.mrb[13].mxu1 }
 0x4b8   : > { %933 = vrot.lane.b32.xlu0 %v914_v10, %s2791_s19  ;;  %v2515_v11 = vpop.f32.mrb[14].mxu1 }
 0x4b9   : > { %v917_v12 = vpop.f32.mrb[15].mxu1 }
 0x4ba   : > { %935 = vrot.lane.b32.xlu1 %v917_v12, %s2791_s19 }
 0x4bc   : > { %937 = vrot.lane.b32.xlu0 %v2514_v9, %s2791_s19 }
 0x4be   : > { %939 = vrot.lane.b32.xlu1 %v2515_v11, %s2791_s19  ;;  %s2402_s19 = sshll.u32 %s2868_s9, 4 }
 0x4c0   : > { %1147 = vperm.xlu0 %2650, %v2312_v13  }
 0x4c2   : > { %1152 = vperm.xlu1 %2651, %v2313_v14  }
 0x4c4   : > { %1157 = vperm.xlu0 %2650, %v2314_v16  }
 0x4c6   : > { %1162 = vperm.xlu1 %2651, %v2315_v17  }
 0x52a   : > { %v934_v22 = vpop.permute.xlu0 %933 }
 0x52b   : > { %v946_v23 = vsel %vm945_vm12, %v934_v22, 0.0 }
 0x52c   : > { %v950_v24 = vadd.f32 %v946_v23, %v898_v6  ;;  %v936_v25 = vpop.permute.xlu1 %935 }
 0x52d   : > { %v947_v26 = vsel %vm945_vm12, %v936_v25, 0.0 }
 0x52e   : > { %v979_v27 = vadd.f32 %v962_v18, %v950_v24  ;;  %v951_v28 = vadd.f32 %v947_v26, %v901_v8  ;;  %v938_v29 = vpop.permute.xlu0 %937 }
 0x52f   : > { %v948_v30 = vsel %vm945_vm12, %v938_v29, 0.0 }
 0x530   : > { %vm983_vm13 = vcmp.gt.f32.partialorder %v979_v27, 0.0  ;;  %v987_v31 = vmul.f32 0.2, %v979_v27  ;;  %v980_v32 = vadd.f32 %v967_v19, %v951_v28  ;;  %v952_v33 = vadd.f32 %v2510_v5, %v948_v30  ;;  %v940_v34 = vpop.permute.xlu1 %939 }
 0x531   : > { %v949_v35 = vsel %vm945_vm12, %v940_v34, 0.0 }
 0x532   : > { %vm984_vm14 = vcmp.gt.f32.partialorder %v980_v32, 0.0  ;;  %v988_v36 = vmul.f32 0.2, %v980_v32  ;;  %v981_v37 = vadd.f32 %v972_v20, %v952_v33  ;;  %v953_v38 = vadd.f32 %v2511_v7, %v949_v35 }
 0x533   : > { %v991_v39 = vsel %vm983_vm13, %v979_v27, %v987_v31 }
 0x534   : > { %vm985_vm15 = vcmp.gt.f32.partialorder %v981_v37, 0.0  ;;  %v989_v40 = vmul.f32 0.2, %v981_v37  ;;  %v982_v41 = vadd.f32 %v977_v21, %v953_v38  ;;  %v992_v42 = vsel %vm984_vm14, %v980_v32, %v988_v36  ;;  %v2675_v38 = vld [vmem:[%s3391_s3 + $0x88] sm:$0xff]  }
 0x535   : > { %v3073_v43 = vadd.f32 %v991_v39, %v3029_v57  ;;  %v3076_v44 = vadd.f32 %v992_v42, %v3032_v58  ;;  %v2676_v39 = vld [vmem:[%s3391_s3 + $0x90] sm:$0xff]   ;;  %vm1503_vm14 = vcmask 785408  }
 0x536   : > { %vm986_vm3 = vcmp.gt.f32.partialorder %v982_v41, 0.0  ;;  %v990_v45 = vmul.f32 0.2, %v982_v41  ;;  %v993_v46 = vsel %vm985_vm15, %v981_v37, %v989_v40  ;;  %v2677_v40 = vld [vmem:[%s3391_s3 + $0x98] sm:$0xff]  }
 0x537   : > { %v1016_v47 = vpack.c.bf16 %v3076_v44, %v3073_v43  ;;  %v3081_v49 = vadd.f32 %v993_v46, %v3037_v63  ;;  %v2332_v63 = vld [vmem:[%s3392_s4 + $0x80] sm:$0xff] }
 0x538   : > { %v994_v48 = vsel %vm986_vm3, %v982_v41, %v990_v45 }
 0x539   : > { %2516 = vmatprep.subr.bf16.mxu0 %v1016_v47  ;;  %v3084_v50 = vadd.f32 %v994_v48, %v3040_v0  ;;  %v2333_v0 = vld [vmem:[%s3392_s4 + $0x88] sm:$0xff] }
 0x53a   : > { %2517 = vmatpush3.bf16.msra.mxu0 %v1016_v47 }
 0x53b   : > { %v1017_v51 = vpack.c.bf16 %v3084_v50, %v3081_v49 }
 0x53d   : > { %2518 = vmatprep.subr.bf16.mxu0 %v1017_v51 }
 0x53e   : > { %2519 = vmatpush3.bf16.msra.mxu0 %v1017_v51  ;;  %v2678_v51 = vld [vmem:[%s3391_s3 + $0xa0] sm:$0xff]  }
 0x53f   : > { %v1148_v4 = vpop.permute.xlu0 %1147 }
 0x541   : > { %2521 = vmatmul.mubr.msk.bf16.vlgmr.msra.gmra.mrb[12].mxu0 %vm480_vm1, %v2671_v52  ;;  %v1153_v5 = vpop.permute.xlu1 %1152  ;;  %v2354_v52 = vld [vmem:[%s3392_s4 + $0xb0] sm:$0xff] }
 0x542   : > { %2524 = vmatprep.mubr.msk.bf16.mxu0 %vm480_vm1, %v2672_v53  ;;  %v2355_v53 = vld [vmem:[%s3392_s4 + $0xb8] sm:$0xff] }
 0x543   : > { %v1158_v6 = vpop.permute.xlu0 %1157 }
 0x545   : > { %v1163_v7 = vpop.permute.xlu1 %1162 }
 0x549   : > { %2525 = vmatmul.mubr.msk.bf16.gmra.mrb[16].mxu0 %vm480_vm1, %v2673_v54 }
 0x54a   : > { %2544 = vmatprep.mubr.msk.bf16.mxu0 %vm480_vm1, %v2678_v51 }
 0x614   : > { %v2522_v55 = vpop.f32.mrb[12].mxu0 }
 0x615   : > { %v1084_v56 = vpop.f32.mrb[13].mxu0 }
 0x616   : > { %v2523_v57 = vpop.f32.mrb[14].mxu0 }
 0x617   : > { %v1087_v58 = vpop.f32.mrb[15].mxu0 }
 0x61c   : > { %v2526_v59 = vpop.f32.mrb[16].mxu0 }
 0x61d   : > { %v1100_v60 = vpop.f32.mrb[17].mxu0 }
 0x61e   : > { %1119 = vrot.lane.b32.xlu0 %v1100_v60, %s2792_s10  ;;  %v2527_v61 = vpop.f32.mrb[18].mxu0 }
 0x61f   : > { %v1103_v62 = vpop.f32.mrb[19].mxu0 }
 0x620   : > { %1121 = vrot.lane.b32.xlu1 %v1103_v62, %s2792_s10 }
 0x622   : > { %1123 = vrot.lane.b32.xlu0 %v2526_v59, %s2792_s10 }
 0x624   : > { %1125 = vrot.lane.b32.xlu1 %v2527_v61, %s2792_s10 }
 0x626   : > { %1333 = vperm.xlu0 %2650, %v2332_v63  }
 0x628   : > { %1338 = vperm.xlu1 %2651, %v2333_v0  }
 0x62a   : > { %1343 = vperm.xlu0 %2650, %v2334_v2  }
 0x62c   : > { %1348 = vperm.xlu1 %2651, %v2335_v3  }
 0x690   : > { %v1120_v8 = vpop.permute.xlu0 %1119 }
 0x691   : > { %v1132_v9 = vsel %vm1131_vm4, %v1120_v8, 0.0 }
 0x692   : > { %v1136_v10 = vadd.f32 %v1132_v9, %v1084_v56  ;;  %v1122_v11 = vpop.permute.xlu1 %1121 }
 0x693   : > { %v1133_v12 = vsel %vm1131_vm4, %v1122_v11, 0.0 }
 0x694   : > { %v1165_v13 = vadd.f32 %v1148_v4, %v1136_v10  ;;  %v1137_v14 = vadd.f32 %v1133_v12, %v1087_v58  ;;  %v1124_v15 = vpop.permute.xlu0 %1123 }
 0x695   : > { %v1134_v16 = vsel %vm1131_vm4, %v1124_v15, 0.0 }
 0x696   : > { %vm1169_vm5 = vcmp.gt.f32.partialorder %v1165_v13, 0.0  ;;  %v1173_v17 = vmul.f32 0.2, %v1165_v13  ;;  %v1166_v18 = vadd.f32 %v1153_v5, %v1137_v14  ;;  %v1138_v19 = vadd.f32 %v2522_v55, %v1134_v16  ;;  %v1126_v20 = vpop.permute.xlu1 %1125 }
 0x697   : > { %v1135_v21 = vsel %vm1131_vm4, %v1126_v20, 0.0 }
 0x698   : > { %vm1170_vm6 = vcmp.gt.f32.partialorder %v1166_v18, 0.0  ;;  %v1174_v22 = vmul.f32 0.2, %v1166_v18  ;;  %v1167_v23 = vadd.f32 %v1158_v6, %v1138_v19  ;;  %v1139_v24 = vadd.f32 %v2523_v57, %v1135_v21 }
 0x699   : > { %v1177_v25 = vsel %vm1169_vm5, %v1165_v13, %v1173_v17 }
 0x69a   : > { %vm1171_vm7 = vcmp.gt.f32.partialorder %v1167_v23, 0.0  ;;  %v1175_v26 = vmul.f32 0.2, %v1167_v23  ;;  %v1168_v27 = vadd.f32 %v1163_v7, %v1139_v24  ;;  %v1178_v28 = vsel %vm1170_vm6, %v1166_v18, %v1174_v22  ;;  %v2679_v24 = vld [vmem:[%s3391_s3 + $0xa8] sm:$0xff]  }
 0x69b   : > { %v3117_v29 = vadd.f32 %v1177_v25, %v3073_v43  ;;  %v3120_v30 = vadd.f32 %v1178_v28, %v3076_v44  ;;  %v2680_v25 = vld [vmem:[%s3391_s3 + $0xb0] sm:$0xff]  }
 0x69c   : > { %vm1172_vm8 = vcmp.gt.f32.partialorder %v1168_v27, 0.0  ;;  %v1176_v31 = vmul.f32 0.2, %v1168_v27  ;;  %v1179_v32 = vsel %vm1171_vm7, %v1167_v23, %v1175_v26  ;;  %v2681_v26 = vld [vmem:[%s3391_s3 + $0xb8] sm:$0xff]  }
 0x69d   : > { %v1202_v33 = vpack.c.bf16 %v3120_v30, %v3117_v29  ;;  %v3125_v35 = vadd.f32 %v1179_v32, %v3081_v49  ;;  %v2352_v49 = vld [vmem:[%s3392_s4 + $0xa0] sm:$0xff] }
 0x69e   : > { %v1180_v34 = vsel %vm1172_vm8, %v1168_v27, %v1176_v31 }
 0x69f   : > { %2528 = vmatprep.subr.bf16.mxu1 %v1202_v33  ;;  %v3128_v36 = vadd.f32 %v1180_v34, %v3084_v50  ;;  %v2353_v50 = vld [vmem:[%s3392_s4 + $0xa8] sm:$0xff] }
 0x6a0   : > { %2529 = vmatpush3.bf16.msra.mxu1 %v1202_v33 }
 0x6a1   : > { %v1203_v37 = vpack.c.bf16 %v3128_v36, %v3125_v35 }
 0x6a3   : > { %2530 = vmatprep.subr.bf16.mxu1 %v1203_v37 }
 0x6a4   : > { %2531 = vmatpush3.bf16.msra.mxu1 %v1203_v37  ;;  %v2682_v37 = vld [vmem:[%s3391_s3 + $0xc0] sm:$0xff]  }
 0x6a5   : > { %v1334_v54 = vpop.permute.xlu0 %1333 }
 0x6a7   : > { %2533 = vmatmul.mubr.msk.bf16.vlgmr.msra.gmra.mrb[16].mxu1 %vm480_vm1, %v2675_v38  ;;  %v1339_v55 = vpop.permute.xlu1 %1338  ;;  %v2374_v38 = vld [vmem:[%s3392_s4 + $0xd0] sm:$0xff] }
 0x6a8   : > { %2536 = vmatprep.mubr.msk.bf16.mxu1 %vm480_vm1, %v2676_v39  ;;  %v2375_v39 = vld [vmem:[%s3392_s4 + $0xd8] sm:$0xff] }
 0x6a9   : > { %v1344_v56 = vpop.permute.xlu0 %1343 }
 0x6ab   : > { %v1349_v57 = vpop.permute.xlu1 %1348 }
 0x6af   : > { %2537 = vmatmul.mubr.msk.bf16.gmra.mrb[20].mxu1 %vm480_vm1, %v2677_v40 }
 0x6b0   : > { %2556 = vmatprep.mubr.msk.bf16.mxu1 %vm480_vm1, %v2682_v37 }
 0x77a   : > { %v2534_v41 = vpop.f32.mrb[16].mxu1 }
 0x77b   : > { %v1270_v42 = vpop.f32.mrb[17].mxu1 }
 0x77c   : > { %v2535_v43 = vpop.f32.mrb[18].mxu1 }
 0x77d   : > { %v1273_v44 = vpop.f32.mrb[19].mxu1 }
 0x782   : > { %v2538_v45 = vpop.f32.mrb[20].mxu1 }
 0x783   : > { %v1286_v46 = vpop.f32.mrb[21].mxu1 }
 0x784   : > { %1305 = vrot.lane.b32.xlu0 %v1286_v46, %s2793_s20  ;;  %v2539_v47 = vpop.f32.mrb[22].mxu1 }
 0x785   : > { %v1289_v48 = vpop.f32.mrb[23].mxu1 }
 0x786   : > { %1307 = vrot.lane.b32.xlu1 %v1289_v48, %s2793_s20 }
 0x788   : > { %1309 = vrot.lane.b32.xlu0 %v2538_v45, %s2793_s20 }
 0x78a   : > { %1311 = vrot.lane.b32.xlu1 %v2539_v47, %s2793_s20  ;;  %s3310_s20 = sand.u32 1, %s2778_s28  }
 0x78b   : > { %s307_s21 = scalar_lea.vmem [#allocation5], %s3310_s20 }
 0x78c   : > { %1519 = vperm.xlu0 %2650, %v2352_v49   ;;  %s2151_s26 = sshll.u32 %s307_s21, 4  ;;  %s2152_s26 = int_to_ptr.vmem [resolvable:$true] %s2151_s26 }
 0x78d   : > { %s2692_s10 = scalar_lea.vmem %s2152_s26, 16  ;;  %p2699_p0 = scmp.lt.s32.totalorder %s2152_s26, %s2697_s13 }
 0x78e   : > { %1524 = vperm.xlu1 %2651, %v2353_v50   ;;  %p2693_p11 = scmp.ne.s32.totalorder %s2152_s26, %s2692_s10 }
 0x790   : > { %1529 = vperm.xlu0 %2650, %v2354_v52   ;;  %p2694_p12 = pnand %p2693_p11, %p2885_p5 }
 0x792   : > { %1534 = vperm.xlu1 %2651, %v2355_v53   ;;  %p2695_p13 = pneg %p2694_p12 }
 0x7f6   : > { %v1306_v58 = vpop.permute.xlu0 %1305 }
 0x7f7   : > { %v1318_v59 = vsel %vm1317_vm9, %v1306_v58, 0.0 }
 0x7f8   : > { %v1322_v60 = vadd.f32 %v1318_v59, %v1270_v42  ;;  %v1308_v61 = vpop.permute.xlu1 %1307 }
 0x7f9   : > { %v1319_v62 = vsel %vm1317_vm9, %v1308_v61, 0.0 }
 0x7fa   : > { %v1351_v63 = vadd.f32 %v1334_v54, %v1322_v60  ;;  %v1323_v0 = vadd.f32 %v1319_v62, %v1273_v44  ;;  %v1310_v1 = vpop.permute.xlu0 %1309 }
 0x7fb   : > { %v1320_v2 = vsel %vm1317_vm9, %v1310_v1, 0.0 }
 0x7fc   : > { %vm1355_vm10 = vcmp.gt.f32.partialorder %v1351_v63, 0.0  ;;  %v1359_v3 = vmul.f32 0.2, %v1351_v63  ;;  %v1352_v4 = vadd.f32 %v1339_v55, %v1323_v0  ;;  %v1324_v5 = vadd.f32 %v2534_v41, %v1320_v2  ;;  %v1312_v6 = vpop.permute.xlu1 %1311 }
 0x7fd   : > { %v1321_v7 = vsel %vm1317_vm9, %v1312_v6, 0.0 }
 0x7fe   : > { %vm1356_vm11 = vcmp.gt.f32.partialorder %v1352_v4, 0.0  ;;  %v1360_v8 = vmul.f32 0.2, %v1352_v4  ;;  %v1353_v9 = vadd.f32 %v1344_v56, %v1324_v5  ;;  %v1325_v10 = vadd.f32 %v2535_v43, %v1321_v7 }
 0x7ff   : > { %v1363_v11 = vsel %vm1355_vm10, %v1351_v63, %v1359_v3 }
 0x800   : > { %vm1357_vm12 = vcmp.gt.f32.partialorder %v1353_v9, 0.0  ;;  %v1361_v12 = vmul.f32 0.2, %v1353_v9  ;;  %v1354_v13 = vadd.f32 %v1349_v57, %v1325_v10  ;;  %v1364_v14 = vsel %vm1356_vm11, %v1352_v4, %v1360_v8  ;;  %v2683_v10 = vld [vmem:[%s3391_s3 + $0xc8] sm:$0xff]  }
 0x801   : > { %v3161_v15 = vadd.f32 %v1363_v11, %v3117_v29  ;;  %v3164_v16 = vadd.f32 %v1364_v14, %v3120_v30  ;;  %v2684_v11 = vld [vmem:[%s3391_s3 + $0xd0] sm:$0xff]  }
 0x802   : > { %vm1358_vm13 = vcmp.gt.f32.partialorder %v1354_v13, 0.0  ;;  %v1362_v17 = vmul.f32 0.2, %v1354_v13  ;;  %v1365_v18 = vsel %vm1357_vm12, %v1353_v9, %v1361_v12  ;;  %v2685_v12 = vld [vmem:[%s3391_s3 + $0xd8] sm:$0xff]  }
 0x803   : > { %v1388_v19 = vpack.c.bf16 %v3164_v16, %v3161_v15  ;;  %v3169_v21 = vadd.f32 %v1365_v18, %v3125_v35  ;;  %v2372_v35 = vld [vmem:[%s3392_s4 + $0xc0] sm:$0xff] }
 0x804   : > { %v1366_v20 = vsel %vm1358_vm13, %v1354_v13, %v1362_v17  ;;  %vm2023_vm13 = vcmask 1040384  }
 0x805   : > { %2540 = vmatprep.subr.bf16.mxu0 %v1388_v19  ;;  %v3172_v22 = vadd.f32 %v1366_v20, %v3128_v36  ;;  %v2373_v36 = vld [vmem:[%s3392_s4 + $0xc8] sm:$0xff] }
 0x806   : > { %2541 = vmatpush3.bf16.msra.mxu0 %v1388_v19 }
 0x807   : > { %v1389_v23 = vpack.c.bf16 %v3172_v22, %v3169_v21 }
 0x809   : > { %2542 = vmatprep.subr.bf16.mxu0 %v1389_v23 }
 0x80a   : > { %2543 = vmatpush3.bf16.msra.mxu0 %v1389_v23  ;;  %v2686_v23 = vld [vmem:[%s3391_s3 + $0xe0] sm:$0xff]  }
 0x80b   : > { %v1520_v40 = vpop.permute.xlu0 %1519 }
 0x80d   : > { %2545 = vmatmul.mubr.msk.bf16.vlgmr.msra.gmra.mrb[20].mxu0 %vm480_vm1, %v2679_v24  ;;  %v1525_v41 = vpop.permute.xlu1 %1524  ;;  %v2394_v24 = vld [vmem:[%s3392_s4 + $0xf0] sm:$0xff] }
 0x80e   : > { %2548 = vmatprep.mubr.msk.bf16.mxu0 %vm480_vm1, %v2680_v25  ;;  %v2395_v25 = vld [vmem:[%s3392_s4 + $0xf8] sm:$0xff] }
 0x80f   : > { %v1530_v42 = vpop.permute.xlu0 %1529 }
 0x811   : > { %v1535_v43 = vpop.permute.xlu1 %1534 }
 0x815   : > { %2549 = vmatmul.mubr.msk.bf16.gmra.mrb[24].mxu0 %vm480_vm1, %v2681_v26 }
 0x816   : > { %2568 = vmatprep.mubr.msk.bf16.mxu0 %vm480_vm1, %v2686_v23 }
 0x8e0   : > { %v2546_v27 = vpop.f32.mrb[20].mxu0 }
 0x8e1   : > { %v1456_v28 = vpop.f32.mrb[21].mxu0 }
 0x8e2   : > { %v2547_v29 = vpop.f32.mrb[22].mxu0 }
 0x8e3   : > { %v1459_v30 = vpop.f32.mrb[23].mxu0 }
 0x8e8   : > { %v2550_v31 = vpop.f32.mrb[24].mxu0 }
 0x8e9   : > { %v1472_v32 = vpop.f32.mrb[25].mxu0 }
 0x8ea   : > { %1491 = vrot.lane.b32.xlu0 %v1472_v32, %s2794_s24  ;;  %v2551_v33 = vpop.f32.mrb[26].mxu0 }
 0x8eb   : > { %v1475_v34 = vpop.f32.mrb[27].mxu0 }
 0x8ec   : > { %1493 = vrot.lane.b32.xlu1 %v1475_v34, %s2794_s24 }
 0x8ee   : > { %1495 = vrot.lane.b32.xlu0 %v2550_v31, %s2794_s24 }
 0x8f0   : > { %1497 = vrot.lane.b32.xlu1 %v2551_v33, %s2794_s24  ;;  %s3319_s24 = scalar_lea.hbm %s3396_s8, %s2402_s19 }
 0x8f2   : > { %1704 = vperm.xlu0 %2650, %v2372_v35  }
 0x8f4   : > { %1709 = vperm.xlu1 %2651, %v2373_v36  }
 0x8f6   : > { %1714 = vperm.xlu0 %2650, %v2374_v38  }
 0x8f8   : > { %1719 = vperm.xlu1 %2651, %v2375_v39  }
 0x95c   : > { %v1492_v44 = vpop.permute.xlu0 %1491 }
 0x95d   : > { %v1504_v45 = vsel %vm1503_vm14, %v1492_v44, 0.0 }
 0x95e   : > { %v1508_v46 = vadd.f32 %v1504_v45, %v1456_v28  ;;  %v1494_v47 = vpop.permute.xlu1 %1493 }
 0x95f   : > { %v1505_v48 = vsel %vm1503_vm14, %v1494_v47, 0.0 }
 0x960   : > { %v1537_v49 = vadd.f32 %v1520_v40, %v1508_v46  ;;  %v1509_v50 = vadd.f32 %v1505_v48, %v1459_v30  ;;  %v1496_v51 = vpop.permute.xlu0 %1495 }
 0x961   : > { %v1506_v52 = vsel %vm1503_vm14, %v1496_v51, 0.0 }
 0x962   : > { %vm1541_vm15 = vcmp.gt.f32.partialorder %v1537_v49, 0.0  ;;  %v1545_v53 = vmul.f32 0.2, %v1537_v49  ;;  %v1538_v54 = vadd.f32 %v1525_v41, %v1509_v50  ;;  %v1510_v55 = vadd.f32 %v2546_v27, %v1506_v52  ;;  %v1498_v56 = vpop.permute.xlu1 %1497 }
 0x963   : > { %v1507_v57 = vsel %vm1503_vm14, %v1498_v56, 0.0 }
 0x964   : > { %vm1542_vm3 = vcmp.gt.f32.partialorder %v1538_v54, 0.0  ;;  %v1546_v58 = vmul.f32 0.2, %v1538_v54  ;;  %v1539_v59 = vadd.f32 %v1530_v42, %v1510_v55  ;;  %v1511_v60 = vadd.f32 %v2547_v29, %v1507_v57 }
 0x965   : > { %v1549_v61 = vsel %vm1541_vm15, %v1537_v49, %v1545_v53  ;;  %vm2797_vm15 = vmmov 0  }
 0x966   : > { %vm1543_vm4 = vcmp.gt.f32.partialorder %v1539_v59, 0.0  ;;  %v1547_v62 = vmul.f32 0.2, %v1539_v59  ;;  %v1540_v63 = vadd.f32 %v1535_v43, %v1511_v60  ;;  %v1550_v0 = vsel %vm1542_vm3, %v1538_v54, %v1546_v58  ;;  %v2687_v60 = vld [vmem:[%s3391_s3 + $0xe8] sm:$0xff]  }
 0x967   : > { %v3205_v1 = vadd.f32 %v1549_v61, %v3161_v15  ;;  %v3208_v2 = vadd.f32 %v1550_v0, %v3164_v16  ;;  %v2688_v61 = vld [vmem:[%s3391_s3 + $0xf0] sm:$0xff]  }
 0x968   : > { %vm1544_vm5 = vcmp.gt.f32.partialorder %v1540_v63, 0.0  ;;  %v1548_v3 = vmul.f32 0.2, %v1540_v63  ;;  %v1551_v4 = vsel %vm1543_vm4, %v1539_v59, %v1547_v62  ;;  %v2689_v62 = vld [vmem:[%s3391_s3 + $0xf8] sm:$0xff]  }
 0x969   : > { %v1574_v5 = vpack.c.bf16 %v3208_v2, %v3205_v1  ;;  %v3213_v7 = vadd.f32 %v1551_v4, %v3169_v21  ;;  %v2392_v21 = vld [vmem:[%s3392_s4 + $0xe0] sm:$0xff] }
 0x96a   : > { %v1552_v6 = vsel %vm1544_vm5, %v1540_v63, %v1548_v3 }
 0x96b   : > { %2552 = vmatprep.subr.bf16.mxu1 %v1574_v5  ;;  %v3216_v8 = vadd.f32 %v1552_v6, %v3172_v22  ;;  %v2393_v22 = vld [vmem:[%s3392_s4 + $0xe8] sm:$0xff] }
 0x96c   : > { %2553 = vmatpush3.bf16.msra.mxu1 %v1574_v5 }
 0x96d   : > { %v1575_v9 = vpack.c.bf16 %v3216_v8, %v3213_v7 }
 0x96f   : > { %2554 = vmatprep.subr.bf16.mxu1 %v1575_v9 }
 0x970   : > { %2555 = vmatpush3.bf16.msra.mxu1 %v1575_v9 }
 0x971   : > { %v1705_v26 = vpop.permute.xlu0 %1704 }
 0x973   : > { %2557 = vmatmul.mubr.msk.bf16.vlgmr.msra.gmra.mrb[24].mxu1 %vm480_vm1, %v2683_v10  ;;  %v1710_v27 = vpop.permute.xlu1 %1709 }
 0x974   : > { %2560 = vmatprep.mubr.msk.bf16.mxu1 %vm480_vm1, %v2684_v11 }
 0x975   : > { %v1715_v28 = vpop.permute.xlu0 %1714 }
 0x977   : > { %v1720_v29 = vpop.permute.xlu1 %1719 }
 0x97b   : > { %2561 = vmatmul.mubr.msk.bf16.gmra.mrb[28].mxu1 %vm480_vm1, %v2685_v12 }
 0xa46   : > { %v2558_v13 = vpop.f32.mrb[24].mxu1 }
 0xa47   : > { %v1642_v14 = vpop.f32.mrb[25].mxu1 }
 0xa48   : > { %v2559_v15 = vpop.f32.mrb[26].mxu1 }
 0xa49   : > { %v1645_v16 = vpop.f32.mrb[27].mxu1 }
 0xa4e   : > { %v2562_v17 = vpop.f32.mrb[28].mxu1 }
 0xa4f   : > { %v1658_v18 = vpop.f32.mrb[29].mxu1 }
 0xa50   : > { %1677 = vrot.lane.b32.xlu0 %v1658_v18, %s2795_s17  ;;  %v2563_v19 = vpop.f32.mrb[30].mxu1 }
 0xa51   : > { %v1661_v20 = vpop.f32.mrb[31].mxu1 }
 0xa52   : > { %1679 = vrot.lane.b32.xlu1 %v1661_v20, %s2795_s17 }
 0xa54   : > { %1681 = vrot.lane.b32.xlu0 %v2562_v17, %s2795_s17 }
 0xa56   : > { %1683 = vrot.lane.b32.xlu1 %v2563_v19, %s2795_s17  ;;  %s2698_s17 = scalar_lea.vmem %s2697_s13, 32 }
 0xa57   : > { %p2700_p1 = scmp.lt.s32.totalorder %s2698_s17, %s2692_s10 }
 0xa58   : > { %1889 = vperm.xlu0 %2650, %v2392_v21  }
 0xa59   : > { %p2701_p2 = por %p2700_p1, %p2699_p0 }
 0xa5a   : > { %1894 = vperm.xlu1 %2651, %v2393_v22  }
 0xa5b   : > { %p2702_p3 = pnand %p2701_p2, %p2695_p13 }
 0xa5c   : > { %1899 = vperm.xlu0 %2650, %v2394_v24  }
 0xa5e   : > { %1904 = vperm.xlu1 %2651, %v2395_v25  }
 0xac2   : > { %v1678_v30 = vpop.permute.xlu0 %1677 }
 0xac3   : > { %v1689_v31 = vsel %vm384_vm0, %v1678_v30, 0.0 }
 0xac4   : > { %v1693_v32 = vadd.f32 %v1689_v31, %v1642_v14  ;;  %v1680_v33 = vpop.permute.xlu1 %1679 }
 0xac5   : > { %v1690_v34 = vsel %vm384_vm0, %v1680_v33, 0.0 }
 0xac6   : > { %v1722_v35 = vadd.f32 %v1705_v26, %v1693_v32  ;;  %v1694_v36 = vadd.f32 %v1690_v34, %v1645_v16  ;;  %v1682_v37 = vpop.permute.xlu0 %1681 }
 0xac7   : > { %v1691_v38 = vsel %vm384_vm0, %v1682_v37, 0.0 }
 0xac8   : > { %vm1726_vm6 = vcmp.gt.f32.partialorder %v1722_v35, 0.0  ;;  %v1730_v39 = vmul.f32 0.2, %v1722_v35  ;;  %v1723_v40 = vadd.f32 %v1710_v27, %v1694_v36  ;;  %v1695_v41 = vadd.f32 %v2558_v13, %v1691_v38  ;;  %v1684_v42 = vpop.permute.xlu1 %1683 }
 0xac9   : > { %v1692_v43 = vsel %vm384_vm0, %v1684_v42, 0.0 }
 0xaca   : > { %vm1727_vm7 = vcmp.gt.f32.partialorder %v1723_v40, 0.0  ;;  %v1731_v44 = vmul.f32 0.2, %v1723_v40  ;;  %v1724_v45 = vadd.f32 %v1715_v28, %v1695_v41  ;;  %v1696_v46 = vadd.f32 %v2559_v15, %v1692_v43  ;;  %v2691_v43 = vld [vmem:[%s3393_s5 + $0x8] ss:$0 sps:$4 sm:$0xff]  }
 0xacb   : > { %v1734_v47 = vsel %vm1726_vm6, %v1722_v35, %v1730_v39 }
 0xacc   : > { %vm1728_vm8 = vcmp.gt.f32.partialorder %v1724_v45, 0.0  ;;  %v1732_v48 = vmul.f32 0.2, %v1724_v45  ;;  %v1725_v49 = vadd.f32 %v1720_v29, %v1696_v46  ;;  %v1735_v50 = vsel %vm1727_vm7, %v1723_v40, %v1731_v44 }
 0xacd   : > { %v3253_v51 = vadd.f32 %v1734_v47, %v3205_v1  ;;  %v3256_v52 = vadd.f32 %v1735_v50, %v3208_v2  ;;  %v444_v44 = vlaneseq }
 0xace   : > { %vm1729_vm9 = vcmp.gt.f32.partialorder %v1725_v49, 0.0  ;;  %v1733_v53 = vmul.f32 0.2, %v1725_v49  ;;  %v1736_v54 = vsel %vm1728_vm8, %v1724_v45, %v1732_v48 }
 0xacf   : > { %v1759_v55 = vpack.c.bf16 %v3256_v52, %v3253_v51  ;;  %v3261_v57 = vadd.f32 %v1736_v54, %v3213_v7  ;;  %v1942_v7 = vld [vmem:[%s3394_s6 + $0x10] sm:$0xff]  ;;  %v445_v45 = vand.u32 127, %v444_v44 }
 0xad0   : > { %v1737_v56 = vsel %vm1729_vm9, %v1725_v49, %v1733_v53 }
 0xad1   : > { %2564 = vmatprep.subr.bf16.mxu0 %v1759_v55  ;;  %v3264_v58 = vadd.f32 %v1737_v56, %v3216_v8  ;;  %v2690_v8 = vld [vmem:[%s3393_s5] sm:$0xff]  }
 0xad2   : > { %2565 = vmatpush3.bf16.msra.mxu0 %v1759_v55  ;;  %2580 = vmatprep.mubr.msk.bf16.mxu1 %vm480_vm1, %v2690_v8  ;;  %v1940_v55 = vld [vmem:[%s3394_s6] sm:$0xff] }
 0xad3   : > { %v1760_v59 = vpack.c.bf16 %v3264_v58, %v3261_v57 }
 0xad5   : > { %2566 = vmatprep.subr.bf16.mxu0 %v1760_v59 }
 0xad6   : > { %2567 = vmatpush3.bf16.msra.mxu0 %v1760_v59 }
 0xad7   : > { %v1890_v9 = vpop.permute.xlu0 %1889 }
 0xad9   : > { %2569 = vmatmul.mubr.msk.bf16.vlgmr.msra.gmra.mrb[28].mxu0 %vm480_vm1, %v2687_v60  ;;  %v1895_v10 = vpop.permute.xlu1 %1894 }
 0xada   : > { %2572 = vmatprep.mubr.msk.bf16.mxu0 %vm480_vm1, %v2688_v61 }
 0xadb   : > { %v1900_v11 = vpop.permute.xlu0 %1899 }
 0xadd   : > { %v1905_v12 = vpop.permute.xlu1 %1904 }
 0xae1   : > { %2573 = vmatmul.mubr.msk.bf16.gmra.mrb[32].mxu0 %vm480_vm1, %v2689_v62 }
 0xbac   : > { %v2570_v63 = vpop.f32.mrb[28].mxu0 }
 0xbad   : > { %v1827_v0 = vpop.f32.mrb[29].mxu0 }
 0xbae   : > { %v2571_v1 = vpop.f32.mrb[30].mxu0 }
 0xbaf   : > { %v1830_v2 = vpop.f32.mrb[31].mxu0 }
 0xbb4   : > { %v2574_v3 = vpop.f32.mrb[32].mxu0 }
 0xbb5   : > { %v1843_v4 = vpop.f32.mrb[33].mxu0 }
 0xbb6   : > { %1862 = vrot.lane.b32.xlu0 %v1843_v4, %s2789_s25  ;;  %v2575_v5 = vpop.f32.mrb[34].mxu0 }
 0xbb7   : > { %v1846_v6 = vpop.f32.mrb[35].mxu0 }
 0xbb8   : > { %1864 = vrot.lane.b32.xlu1 %v1846_v6, %s2789_s25 }
 0xbba   : > { %1866 = vrot.lane.b32.xlu0 %v2574_v3, %s2789_s25  ;;  %v2798_v3 = vmov 0.0  }
 0xbbc   : > { %1868 = vrot.lane.b32.xlu1 %v2575_v5, %s2789_s25  ;;  %s2126_s25 = scalar_lea.sflag [#allocation6], %s3310_s20 }
 0xbbe   : > { %1955 = vperm.xlu0 %2650, %v1942_v7  }
 0xc28   : > { %v1863_v13 = vpop.permute.xlu0 %1862 }
 0xc29   : > { %v1874_v14 = vsel %vm574_vm2, %v1863_v13, 0.0 }
 0xc2a   : > { %v1878_v15 = vadd.f32 %v1874_v14, %v1827_v0  ;;  %v1865_v16 = vpop.permute.xlu1 %1864 }
 0xc2b   : > { %v1875_v17 = vsel %vm574_vm2, %v1865_v16, 0.0  ;;  %v2799_v16 = vmov 1.0  }
 0xc2c   : > { %v1907_v18 = vadd.f32 %v1890_v9, %v1878_v15  ;;  %v1879_v19 = vadd.f32 %v1875_v17, %v1830_v2  ;;  %v1867_v20 = vpop.permute.xlu0 %1866  ;;  %v2796_v2 = vmov 0.0|0.0  }
 0xc2d   : > { %v1876_v21 = vsel %vm574_vm2, %v1867_v20, 0.0 }
 0xc2e   : > { %vm1911_vm0 = vcmp.gt.f32.partialorder %v1907_v18, 0.0  ;;  %v1915_v22 = vmul.f32 0.2, %v1907_v18  ;;  %v1908_v23 = vadd.f32 %v1895_v10, %v1879_v19  ;;  %v1880_v24 = vadd.f32 %v2570_v63, %v1876_v21  ;;  %v1869_v25 = vpop.permute.xlu1 %1868 }
 0xc2f   : > { %v1877_v26 = vsel %vm574_vm2, %v1869_v25, 0.0  ;;  %vm2021_vm2 = vcmp.lt.s32.totalorder %v445_v45, 64 }
 0xc30   : > { %vm1912_vm10 = vcmp.gt.f32.partialorder %v1908_v23, 0.0  ;;  %v1916_v27 = vmul.f32 0.2, %v1908_v23  ;;  %v1909_v28 = vadd.f32 %v1900_v11, %v1880_v24  ;;  %v1881_v29 = vadd.f32 %v2571_v1, %v1877_v26  ;;  %v1941_v1 = vld [vmem:[%s3394_s6 + $0x8] sm:$0xff] }
 0xc31   : > { %v1919_v30 = vsel %vm1911_vm0, %v1907_v18, %v1915_v22 }
 0xc32   : > { %vm1913_vm11 = vcmp.gt.f32.partialorder %v1909_v28, 0.0  ;;  %v1917_v31 = vmul.f32 0.2, %v1909_v28  ;;  %v1910_v32 = vadd.f32 %v1905_v12, %v1881_v29  ;;  %v1920_v33 = vsel %vm1912_vm10, %v1908_v23, %v1916_v27 }
 0xc33   : > { %v1923_v34 = vadd.f32 %v1919_v30, %v3253_v51  ;;  %v1924_v35 = vadd.f32 %v1920_v33, %v3256_v52 }
 0xc34   : > { %vm1914_vm12 = vcmp.gt.f32.partialorder %v1910_v32, 0.0  ;;  %v1918_v36 = vmul.f32 0.2, %v1910_v32  ;;  %v1921_v37 = vsel %vm1913_vm11, %v1909_v28, %v1917_v31 }
 0xc35   : > { %v1938_v38 = vpack.c.bf16 %v1924_v35, %v1923_v34  ;;  %v1925_v40 = vadd.f32 %v1921_v37, %v3261_v57 }
 0xc36   : > { %v1922_v39 = vsel %vm1914_vm12, %v1910_v32, %v1918_v36 }
 0xc37   : > { %2576 = vmatprep.subr.bf16.mxu1 %v1938_v38  ;;  %v1926_v41 = vadd.f32 %v1922_v39, %v3264_v58 }
 0xc38   : > { %2577 = vmatpush3.bf16.msra.mxu1 %v1938_v38 }
 0xc39   : > { %v1939_v42 = vpack.c.bf16 %v1926_v41, %v1925_v40 }
 0xc3b   : > { %2578 = vmatprep.subr.bf16.mxu1 %v1939_v42 }
 0xc3c   : > { %2579 = vmatpush3.bf16.msra.mxu1 %v1939_v42 }
 0xc3d   : > { %v1956_v46 = vpop.permute.xlu0 %1955  ;;  %2591 = vmatprep.subr.bf16.mxu1 %v2796_v2 }
 0xc3f   : > { %2581 = vmatmul.mubr.msk.bf16.vlgmr.msra.gmra.mrb[32].mxu1 %vm480_vm1, %v2691_v43 }
 0xc40   : > { %2588 = vmatprep.mubr.msk.f32.mxu1 %vm2797_vm15, %v2798_v3 }
 0xd12   : > { %v2582_v47 = vpop.f32.mrb[32].mxu1 }
 0xd13   : > { %v2015_v48 = vadd.f32 %v2582_v47, %v1956_v46  ;;  %v2006_v49 = vpop.f32.mrb[33].mxu1 }
 0xd14   : > { %v2583_v50 = vpop.f32.mrb[34].mxu1 }
 0xd15   : > { %v2020_v51 = vmax.f32 %v2015_v48, 0.0  ;;  %v2009_v52 = vpop.f32.mrb[35].mxu1 }
 0xd17   : > { %v2022_v53 = vsel %vm2021_vm2, %v2020_v51, 0.0 }
 0xd18   : > { %v2024_v54 = vsel %vm2023_vm13, %v2022_v53, -inf }
 0xd19   : > { %2025 = vmax.xlane.f32.xlu1 %v2024_v54 }
 0xd2a   : > { %1945 = vperm.xlu1 %2651, %v1940_v55  }
 0xda6   : > { %v2026_v56 = vpop.xlane.xlu1 %2025 }
 0xda7   : > { %vm2027_vm1 = vcmp.eq.f32.partialorder %v2022_v53, %v2026_v56 }
 0xda8   : > { %v2028_v57 = vsel %vm2027_vm1, %v445_v45, 128 }
 0xda9   : > { %v2029_v58 = vsel %vm2023_vm13, %v2028_v57, 2147483647 }
 0xdaa   : > { %v2031_v59 = vshra.s32 %v2029_v58, 16  ;;  %v2030_v61 = vand.u32 65535, %v2029_v58  ;;  %v1946_v9 = vpop.permute.xlu1 %1945 }
 0xdab   : > { %v2007_v13 = vadd.f32 %v2006_v49, %v1946_v9 }
 0xdac   : > { %v2033_v60 = vcvt.s32.f32 %v2031_v59  ;;  %v2032_v63 = vcvt.s32.f32 %v2030_v61 }
 0xdae   : > { %2034 = vmin.xlane.f32.xlu0 %v2033_v60 }
 0xe3b   : > { %v2035_v62 = vpop.xlane.xlu0 %2034 }
 0xe3c   : > { %vm2036_vm14 = vcmp.eq.f32.partialorder %v2033_v60, %v2035_v62  ;;  %v2041_v4 = vcvt.f32.s32 %v2035_v62 }
 0xe3d   : > { %v2037_v0 = vsel %vm2036_vm14, %v2032_v63, inf }
 0xe3e   : > { %2038 = vmin.xlane.f32.xlu0 %v2037_v0  ;;  %v2042_v6 = vshll.u32 %v2041_v4, 16 }
 0xe54   : > { %1950 = vperm.xlu0 %2650, %v1941_v1  }
 0xecb   : > { %v2039_v5 = vpop.xlane.xlu0 %2038 }
 0xecc   : > { %v2040_v7 = vcvt.f32.s32 %v2039_v5 }
 0xece   : > { %v2043_v8 = vadd.s32 %v2042_v6, %v2040_v7 }
 0xed0   : > { %vm2044_vm3 = vcmp.eq.s32.totalorder %v445_v45, %v2043_v8 }
 0xed1   : > { %v2400_v10 = vsel %vm2044_vm3, 1.0, %v2798_v3 }
 0xed2   : > { %v2047_v11 = vmul.f32 %v2400_v10, %v2026_v56 }
 0xed3   : > { %v1951_v12 = vpop.permute.xlu0 %1950 }
 0xed4   : > { %v2010_v14 = vadd.f32 %v2009_v52, %v1951_v12  ;;  %2048 = vst [vmem:[%s307_s21] sm:$0x1] %v2047_v11 }
 0xed6   : > { %v2592_v15 = vpack.c.bf16 %v2010_v14, %v2007_v13 }
 0xed8   : > { %2593 = vmatpush3.bf16.xpose.msra.mxu1 %v2592_v15 }
 0xedf   : > { %2589 = vmatmul.mubr.msk.f32.vlgmr.msra.gmra.mrb[36].mxu1 %vm2044_vm3, %v2799_v16 }
 0xee0   : > { %2705 = shalt.err (!%p2702_p3)
}
 0xee1   : > { %s2706_s18 = scalar_lea.hbm %s3319_s24, 16  ;;  %s2710_s23 = scalar_lea.hbm %s3396_s8, 32 }
 0xee2   : > { %p2707_p4 = scmp.ne.s32.totalorder %s3319_s24, %s2706_s18  ;;  %p2711_p9 = scmp.lt.u32.totalorder %s3319_s24, %s3396_s8 }
 0xee3   : > { %p2712_p10 = scmp.lt.u32.totalorder %s2710_s23, %s2706_s18  ;;  %p2714_p12 = scmp.lt.u32.totalorder %s2706_s18, %s3319_s24 }
 0xee4   : > { %p2708_p7 = pnand %p2707_p4, %p2885_p5 }
 0xee5   : > { %p2713_p11 = por %p2712_p10, %p2711_p9 }
 0xee6   : > { %p2709_p8 = pneg %p2708_p7 }
 0xee7   : > { %p2715_p13 = por %p2714_p12, %p2713_p11 }
 0xee9   : > { %p2716_p0 = pnand %p2715_p13, %p2709_p8 }
 0xeeb   : > { %2719 = shalt.err (!%p2716_p0)
}
 0xeec   : > { %2595 = dma.vmem_to_hbm [thread:$0]  (%p2885_p5), %s2152_s26, 16, %s3319_s24, %s2126_s25   ;;  %vm2119_vm4 = vcmask 122880  }
 0xeed   : > { %s301_s10 = scalar_lea.vmem [#allocation3], %s3310_s20  ;;  %s3345_s23 = scalar_lea.hbm %s3395_s7, %s2402_s19 }
 0xeee   : > { %s2138_s17 = sshll.u32 %s301_s10, 4  ;;  %s2122_s18 = scalar_lea.sflag [#allocation4], %s3310_s20  ;;  %s3347_s17 = int_to_ptr.vmem [resolvable:$true] %s2138_s17 }
 0xeef   : > { %s2720_s12 = scalar_lea.vmem %s3347_s17, 16  ;;  %s2801_s9 = smov [#allocation3]  }
 0xef0   : > { %p2721_p1 = scmp.ne.s32.totalorder %s3347_s17, %s2720_s12  ;;  %s2724_s24 = sshll.u32 %s2801_s9, 4  ;;  %s2725_s24 = int_to_ptr.vmem [resolvable:$false] %s2724_s24 }
 0xef1   : > { %s2726_s26 = scalar_lea.vmem %s2725_s24, 32  ;;  %p2727_p4 = scmp.lt.s32.totalorder %s3347_s17, %s2725_s24 }
 0xef2   : > { %p2722_p2 = pnand %p2721_p1, %p2885_p5  ;;  %p2728_p7 = scmp.lt.s32.totalorder %s2726_s26, %s2720_s12 }
 0xef4   : > { %p2723_p3 = pneg %p2722_p2  ;;  %p2729_p8 = por %p2728_p7, %p2727_p4 }
 0xef6   : > { %p2730_p9 = pnand %p2729_p8, %p2723_p3 }
 0xfb2   : > { %v2115_v17 = vpop.f32.mrb[36].mxu1 }
 0xfb3   : > { %2120 = vst.msk [vmem:[%s301_s10] sm:$0x1] %vm2119_vm4, %v2115_v17  ;;  %v2590_v18 = vpop.f32.mrb[37].mxu1 }
 0xfb4   : > { %2733 = shalt.err (!%p2730_p9)
}
 0xfb5   : > { %s2734_s20 = scalar_lea.hbm %s3345_s23, 16  ;;  %s2738_s13 = scalar_lea.hbm %s3395_s7, 32 }
 0xfb6   : > { %p2735_p10 = scmp.ne.s32.totalorder %s3345_s23, %s2734_s20  ;;  %p2739_p13 = scmp.lt.u32.totalorder %s3345_s23, %s3395_s7 }
 0xfb7   : > { %p2740_p0 = scmp.lt.u32.totalorder %s2738_s13, %s2734_s20  ;;  %p2742_p2 = scmp.lt.u32.totalorder %s2734_s20, %s3345_s23 }
 0xfb8   : > { %p2736_p11 = pnand %p2735_p10, %p2885_p5 }
 0xfb9   : > { %p2741_p1 = por %p2740_p0, %p2739_p13 }
 0xfba   : > { %p2737_p12 = pneg %p2736_p11 }
 0xfbb   : > { %p2743_p3 = por %p2742_p2, %p2741_p1 }
 0xfbd   : > { %p2744_p4 = pnand %p2743_p3, %p2737_p12 }
 0xfbf   : > { %2747 = shalt.err (!%p2744_p4)
}
 0xfc0   : > { %2594 = dma.vmem_to_hbm [thread:$0]  (%p2885_p5), %s3347_s17, 16, %s3345_s23, %s2122_s18  }
 0xfc1 PF: > { %p2605_p7 = scmp.ge.s32.totalorder %s2786_s30, 2  ;;  %s2163_s22 = sand.u32 1, %s2774_s27  }
 0xfc2   : > { %s2164_s12 = scalar_lea.sflag [#allocation4], %s2163_s22 }
 0xfc3   : > { %p2599_p8 = pnand %p2605_p7, %p2889_p6 }
 0xfc5   : > { %2765 = dma.done.wait (!%p2599_p8), %s2164_s12, 16  }
 0xfc6   : > { %2767 = vsyncadd (!%p2599_p8), %s2164_s12, 4294967280  ;;  %s2172_s9 = scalar_lea.sflag [#allocation6], %s2163_s22 }
 0xfc7   : > { %2769 = dma.done.wait (!%p2599_p8), %s2172_s9, 16  }
 0xfc8   : > { %2771 = vsyncadd (!%p2599_p8), %s2172_s9, 4294967280  ;;  %p22_p5 = scmp.ge.s32.totalorder %s2872_s11, 4   ;;  %s3399_s27 = smov %s2778_s28 }
 0xfc9   : > { %s3400_s28 = smov %s2782_s29  ;;  %s3401_s29 = smov %s2883_s14 }
 0xfca   : > { %s3402_s30 = smov %s2872_s11  ;;  %24 = sbr.rel (!%p22_p5) target bundleno = 5 (0x5), region = 114 }
 0xfd1   :  { %2176 = vsyncpa [#allocation4], 1 }
 0xfd2   :  { %2178 = vsyncpa [#allocation4 + $0x1], 1 }
 0xfd3   :  { %2179 = vsyncpa [#allocation6], 1 }
 0xfd4   :  { %2181 = vsyncpa [#allocation6 + $0x1], 1 }

</bundles_post_ra>
